<compile_context>
chip_gen: v7x
topology: tpu7x:2x2x1
jax: 0.10.0
libtpu: 0.0.40
codegen_flags: <defaults>
</compile_context>

<pallas_src>
import jax
import jax.numpy as jnp
from jax.experimental import pallas as pl
from jax.experimental.pallas import tpu as pltpu


def _make_lstm_kernel(num_layers: int, hidden_dim: int, seq_len: int, batch: int):
    H, T, B = hidden_dim, seq_len, batch
    TB = T * B

    def kernel(*refs):
        # refs = (x_flat, [w_ih, w_hh, b] * num_layers, fc_w, fc_b, out, hseq)
        x_ref = refs[0]                              # (T*B, D)        f32
        layer_refs = refs[1:1 + 3 * num_layers]
        fcw_ref = refs[1 + 3 * num_layers]           # (O, H)          f32
        fcb_ref = refs[2 + 3 * num_layers]           # (1, O)          f32
        out_ref = refs[3 + 3 * num_layers]           # (B, O)          f32
        hseq_ref = refs[4 + 3 * num_layers]          # (T*B, H) scratch f32

        h = None
        for layer in range(num_layers):
            w_ih = layer_refs[3 * layer][...]        # (D_in or H, 4H), g-cols pre-scaled x2
            w_hh = layer_refs[3 * layer + 1][...]    # (H, 4H),        g-cols pre-scaled x2
            b = layer_refs[3 * layer + 2][...]       # (1, 4H),        g-cols pre-scaled x2

            # One input-projection matmul for ALL T timesteps of this layer
            # (off the serial recurrence chain), bias broadcast hoisted.
            inp = x_ref[...] if layer == 0 else hseq_ref[...]          # (T*B, D_in)
            pre = jnp.dot(inp, w_ih, preferred_element_type=jnp.float32)
            pre = pre + jnp.broadcast_to(b, (TB, 4 * H))               # (T*B, 4H)

            h = jnp.zeros((B, H), jnp.float32)
            c = jnp.zeros((B, H), jnp.float32)
            write_seq = (layer + 1 < num_layers)
            for t in range(T):
                # Serial path: one small MXU dot + one sigmoid pass + one tanh(c).
                gates = pre[t * B:(t + 1) * B, :] + jnp.dot(
                    h, w_hh, preferred_element_type=jnp.float32)       # (B, 4H)
                sig = jax.nn.sigmoid(gates)                            # single EUP pass
                i_g = sig[:, 0 * H:1 * H]
                f_g = sig[:, 1 * H:2 * H]
                g_g = 2.0 * sig[:, 2 * H:3 * H] - 1.0                  # == tanh (pre-scaled)
                o_g = sig[:, 3 * H:4 * H]
                c = f_g * c + i_g * g_g
                h = o_g * jnp.tanh(c)
                if write_seq:
                    # Feed next layer's single projection matmul via VMEM slab.
                    hseq_ref[t * B:(t + 1) * B, :] = h

        # Final FC on the last-timestep hidden of the top layer.
        # O is tiny -> VPU broadcast-multiply + lane reduction, no MXU push.
        w_fc = fcw_ref[...]                                            # (O, H)
        fcb = fcb_ref[...]                                             # (1, O)
        O = out_ref.shape[1]
        for o in range(O):
            col = jnp.sum(h * w_fc[o:o + 1, :], axis=-1, keepdims=True)  # (B, 1)
            out_ref[:, o:o + 1] = (col + fcb[:, o:o + 1]).astype(out_ref.dtype)

    return kernel


def stock_price_lstm_forward(x, layer_params, fc_w, fc_b, *, hidden_dim):
    """x: (B, T, D) float32. layer_params: list of (w_ih, w_hh, b) with
    w_ih: (D_in, 4H), w_hh: (H, 4H), b: (1, 4H) (gate order i,f,g,o)."""
    B, T, D = x.shape
    H = hidden_dim
    num_layers = len(layer_params)
    O = fc_w.shape[1]

    # Time-major, flattened to (T*B, D): layout plumbing so the kernel does a
    # single input-projection matmul for layer 0.
    x_flat = jnp.transpose(x, (1, 0, 2)).reshape(T * B, D).astype(jnp.float32)

    # Fold tanh(a) == 2*sigmoid(2a) - 1 into the g-gate columns (offline x2).
    gate_scale = jnp.concatenate(
        [jnp.ones((1, H), jnp.float32), jnp.ones((1, H), jnp.float32),
         jnp.full((1, H), 2.0, jnp.float32), jnp.ones((1, H), jnp.float32)],
        axis=1)

    flat_params = []
    for (w_ih, w_hh, b) in layer_params:
        flat_params += [
            (w_ih.astype(jnp.float32) * gate_scale),
            (w_hh.astype(jnp.float32) * gate_scale),
            (b.astype(jnp.float32) * gate_scale),
        ]

    fc_w_t = jnp.transpose(fc_w).astype(jnp.float32)   # (O, H): lane-reduce FC
    fc_b = fc_b.astype(jnp.float32)                    # (1, O)

    kernel = _make_lstm_kernel(num_layers, H, T, B)
    n_inputs = 1 + 3 * num_layers + 2

    return pl.pallas_call(
        kernel,
        out_shape=jax.ShapeDtypeStruct((B, O), jnp.float32),
        in_specs=[pl.BlockSpec(memory_space=pltpu.MemorySpace.VMEM)] * n_inputs,
        out_specs=pl.BlockSpec(memory_space=pltpu.MemorySpace.VMEM),
        scratch_shapes=[pltpu.VMEM((T * B, H), jnp.float32)],
    )(x_flat, *flat_params, fc_w_t, fc_b)


def _reference_forward(x, layer_params, fc_w, fc_b, *, hidden_dim):
    """Pure-JAX reference mirroring torch.nn.LSTM (eval mode) + Linear."""
    B, T, _ = x.shape
    H = hidden_dim
    seq = x
    for (w_ih, w_hh, b) in layer_params:
        h = jnp.zeros((B, H), jnp.float32)
        c = jnp.zeros((B, H), jnp.float32)
        outs = []
        for t in range(T):
            gates = seq[:, t, :] @ w_ih + h @ w_hh + b
            i_g = jax.nn.sigmoid(gates[:, 0 * H:1 * H])
            f_g = jax.nn.sigmoid(gates[:, 1 * H:2 * H])
            g_g = jnp.tanh(gates[:, 2 * H:3 * H])
            o_g = jax.nn.sigmoid(gates[:, 3 * H:4 * H])
            c = f_g * c + i_g * g_g
            h = o_g * jnp.tanh(c)
            outs.append(h)
        seq = jnp.stack(outs, axis=1)
    return seq[:, -1, :] @ fc_w + fc_b


def init_params(key, input_dim, hidden_dim, num_layers, output_dim):
    """Deterministic init, PyTorch-style U(-1/sqrt(H), 1/sqrt(H))."""
    bound = 1.0 / jnp.sqrt(jnp.float32(hidden_dim))
    layer_params = []
    for layer in range(num_layers):
        in_dim = input_dim if layer == 0 else hidden_dim
        key, k1, k2, k3, k4 = jax.random.split(key, 5)
        # Pre-transposed: (in_features, 4*hidden), gate blocks ordered i,f,g,o.
        w_ih = jax.random.uniform(k1, (in_dim, 4 * hidden_dim), jnp.float32, -bound, bound)
        w_hh = jax.random.uniform(k2, (hidden_dim, 4 * hidden_dim), jnp.float32, -bound, bound)
        b_ih = jax.random.uniform(k3, (1, 4 * hidden_dim), jnp.float32, -bound, bound)
        b_hh = jax.random.uniform(k4, (1, 4 * hidden_dim), jnp.float32, -bound, bound)
        layer_params.append((w_ih, w_hh, b_ih + b_hh))
    key, k5, k6 = jax.random.split(key, 3)
    fc_bound = 1.0 / jnp.sqrt(jnp.float32(hidden_dim))
    fc_w = jax.random.uniform(k5, (hidden_dim, output_dim), jnp.float32, -fc_bound, fc_bound)
    fc_b = jax.random.uniform(k6, (1, output_dim), jnp.float32, -fc_bound, fc_bound)
    return layer_params, fc_w, fc_b


if __name__ == "__main__":
    # Small shapes consistent with the module's forward.
    batch, seq_len, input_dim = 2, 8, 4
    hidden_dim, num_layers, output_dim = 32, 2, 1

    key = jax.random.PRNGKey(0)
    key, kx = jax.random.split(key)
    x = jax.random.normal(kx, (batch, seq_len, input_dim), jnp.float32)

    layer_params, fc_w, fc_b = init_params(key, input_dim, hidden_dim, num_layers, output_dim)

    out = stock_price_lstm_forward(x, layer_params, fc_w, fc_b, hidden_dim=hidden_dim)
    out = jax.block_until_ready(out)

    ref = _reference_forward(x, layer_params, fc_w, fc_b, hidden_dim=hidden_dim)
    assert out.shape == (batch, output_dim)
    assert jnp.allclose(out, ref, atol=2e-4, rtol=2e-4), (out, ref)

    print("KERNEL_OK")
</pallas_src>

<mosaic_0001>
module attributes {stable_mosaic.version = 11 : i64} {
  func.func @kernel(%arg0: memref<16x4xf32, #tpu.memory_space<vmem>>, %arg1: memref<4x128xf32, #tpu.memory_space<vmem>>, %arg2: memref<32x128xf32, #tpu.memory_space<vmem>>, %arg3: memref<1x128xf32, #tpu.memory_space<vmem>>, %arg4: memref<32x128xf32, #tpu.memory_space<vmem>>, %arg5: memref<32x128xf32, #tpu.memory_space<vmem>>, %arg6: memref<1x128xf32, #tpu.memory_space<vmem>>, %arg7: memref<1x32xf32, #tpu.memory_space<vmem>>, %arg8: memref<1x1xf32, #tpu.memory_space<vmem>>, %arg9: memref<2x1xf32, #tpu.memory_space<vmem>>, %arg10: memref<16x32xf32, #tpu.memory_space<vmem>>) attributes {dimension_semantics = [], scalar_prefetch = 0 : i64, scratch_operands = 1 : i64, tpu.core_type = #tpu.core_type<tc>} {
    %c0 = arith.constant 0 : index
    %c0_0 = arith.constant 0 : index
    %0 = vector.load %arg1[%c0, %c0_0] : memref<4x128xf32, #tpu.memory_space<vmem>>, vector<4x128xf32>
    %c0_1 = arith.constant 0 : index
    %c0_2 = arith.constant 0 : index
    %1 = vector.load %arg2[%c0_1, %c0_2] : memref<32x128xf32, #tpu.memory_space<vmem>>, vector<32x128xf32>
    %c0_3 = arith.constant 0 : index
    %c0_4 = arith.constant 0 : index
    %2 = vector.load %arg3[%c0_3, %c0_4] : memref<1x128xf32, #tpu.memory_space<vmem>>, vector<1x128xf32>
    %c0_5 = arith.constant 0 : index
    %c0_6 = arith.constant 0 : index
    %3 = vector.load %arg0[%c0_5, %c0_6] : memref<16x4xf32, #tpu.memory_space<vmem>>, vector<16x4xf32>
    %cst = arith.constant dense<0.000000e+00> : vector<16x128xf32>
    %4 = tpu.matmul %3, %0, %cst {dimension_numbers = #tpu.dot_dimension_numbers<[1], [0], [0], [1], [0, 0, 1, 1], [], []>} : vector<16x4xf32>, vector<4x128xf32>, vector<16x128xf32> -> vector<16x128xf32>
    %5 = vector.shape_cast %2 : vector<1x128xf32> to vector<1x128xf32>
    %6 = vector.broadcast %5 : vector<1x128xf32> to vector<16x128xf32>
    %7 = arith.addf %4, %6 : vector<16x128xf32>
    %cst_7 = arith.constant 0.000000e+00 : f32
    %8 = vector.broadcast %cst_7 : f32 to vector<2x32xf32>
    %cst_8 = arith.constant 0.000000e+00 : f32
    %9 = vector.broadcast %cst_8 : f32 to vector<2x32xf32>
    %10 = vector.extract_strided_slice %7 {offsets = [0, 0], sizes = [2, 128], strides = [1, 1]} : vector<16x128xf32> to vector<2x128xf32>
    %cst_9 = arith.constant dense<0.000000e+00> : vector<2x128xf32>
    %11 = tpu.matmul %8, %1, %cst_9 {dimension_numbers = #tpu.dot_dimension_numbers<[1], [0], [0], [1], [0, 0, 1, 1], [], []>} : vector<2x32xf32>, vector<32x128xf32>, vector<2x128xf32> -> vector<2x128xf32>
    %12 = arith.addf %10, %11 : vector<2x128xf32>
    %13 = arith.negf %12 : vector<2x128xf32>
    %14 = math.exp %13 : vector<2x128xf32>
    %cst_10 = arith.constant 1.000000e+00 : f32
    %15 = vector.broadcast %cst_10 : f32 to vector<2x128xf32>
    %16 = arith.addf %15, %14 : vector<2x128xf32>
    %17 = arith.divf %15, %16 : vector<2x128xf32>
    %18 = vector.extract_strided_slice %17 {offsets = [0, 0], sizes = [2, 32], strides = [1, 1]} : vector<2x128xf32> to vector<2x32xf32>
    %19 = vector.extract_strided_slice %17 {offsets = [0, 32], sizes = [2, 32], strides = [1, 1]} : vector<2x128xf32> to vector<2x32xf32>
    %20 = vector.extract_strided_slice %17 {offsets = [0, 64], sizes = [2, 32], strides = [1, 1]} : vector<2x128xf32> to vector<2x32xf32>
    %cst_11 = arith.constant 2.000000e+00 : f32
    %21 = vector.broadcast %cst_11 : f32 to vector<2x32xf32>
    %22 = arith.mulf %21, %20 : vector<2x32xf32>
    %cst_12 = arith.constant 1.000000e+00 : f32
    %23 = vector.broadcast %cst_12 : f32 to vector<2x32xf32>
    %24 = arith.subf %22, %23 : vector<2x32xf32>
    %25 = vector.extract_strided_slice %17 {offsets = [0, 96], sizes = [2, 32], strides = [1, 1]} : vector<2x128xf32> to vector<2x32xf32>
    %26 = arith.mulf %19, %9 : vector<2x32xf32>
    %27 = arith.mulf %18, %24 : vector<2x32xf32>
    %28 = arith.addf %26, %27 : vector<2x32xf32>
    %29 = math.tanh %28 : vector<2x32xf32>
    %30 = arith.mulf %25, %29 : vector<2x32xf32>
    %c0_13 = arith.constant 0 : index
    %c0_14 = arith.constant 0 : index
    %31 = vector.load %arg10[%c0_13, %c0_14] : memref<16x32xf32, #tpu.memory_space<vmem>>, vector<2x32xf32>
    tpu.vector_store %arg10[%c0_13, %c0_14], %30 {strides = array<i32>} : memref<16x32xf32, #tpu.memory_space<vmem>>, vector<2x32xf32>,
    %32 = vector.extract_strided_slice %7 {offsets = [2, 0], sizes = [2, 128], strides = [1, 1]} : vector<16x128xf32> to vector<2x128xf32>
    %cst_15 = arith.constant dense<0.000000e+00> : vector<2x128xf32>
    %33 = tpu.matmul %30, %1, %cst_15 {dimension_numbers = #tpu.dot_dimension_numbers<[1], [0], [0], [1], [0, 0, 1, 1], [], []>} : vector<2x32xf32>, vector<32x128xf32>, vector<2x128xf32> -> vector<2x128xf32>
    %34 = arith.addf %32, %33 : vector<2x128xf32>
    %35 = arith.negf %34 : vector<2x128xf32>
    %36 = math.exp %35 : vector<2x128xf32>
    %cst_16 = arith.constant 1.000000e+00 : f32
    %37 = vector.broadcast %cst_16 : f32 to vector<2x128xf32>
    %38 = arith.addf %37, %36 : vector<2x128xf32>
    %39 = arith.divf %37, %38 : vector<2x128xf32>
    %40 = vector.extract_strided_slice %39 {offsets = [0, 0], sizes = [2, 32], strides = [1, 1]} : vector<2x128xf32> to vector<2x32xf32>
    %41 = vector.extract_strided_slice %39 {offsets = [0, 32], sizes = [2, 32], strides = [1, 1]} : vector<2x128xf32> to vector<2x32xf32>
    %42 = vector.extract_strided_slice %39 {offsets = [0, 64], sizes = [2, 32], strides = [1, 1]} : vector<2x128xf32> to vector<2x32xf32>
    %cst_17 = arith.constant 2.000000e+00 : f32
    %43 = vector.broadcast %cst_17 : f32 to vector<2x32xf32>
    %44 = arith.mulf %43, %42 : vector<2x32xf32>
    %cst_18 = arith.constant 1.000000e+00 : f32
    %45 = vector.broadcast %cst_18 : f32 to vector<2x32xf32>
    %46 = arith.subf %44, %45 : vector<2x32xf32>
    %47 = vector.extract_strided_slice %39 {offsets = [0, 96], sizes = [2, 32], strides = [1, 1]} : vector<2x128xf32> to vector<2x32xf32>
    %48 = arith.mulf %41, %28 : vector<2x32xf32>
    %49 = arith.mulf %40, %46 : vector<2x32xf32>
    %50 = arith.addf %48, %49 : vector<2x32xf32>
    %51 = math.tanh %50 : vector<2x32xf32>
    %52 = arith.mulf %47, %51 : vector<2x32xf32>
    %c2 = arith.constant 2 : index
    %c0_19 = arith.constant 0 : index
    %53 = vector.load %arg10[%c2, %c0_19] : memref<16x32xf32, #tpu.memory_space<vmem>>, vector<2x32xf32>
    tpu.vector_store %arg10[%c2, %c0_19], %52 {strides = array<i32>} : memref<16x32xf32, #tpu.memory_space<vmem>>, vector<2x32xf32>,
    %54 = vector.extract_strided_slice %7 {offsets = [4, 0], sizes = [2, 128], strides = [1, 1]} : vector<16x128xf32> to vector<2x128xf32>
    %cst_20 = arith.constant dense<0.000000e+00> : vector<2x128xf32>
    %55 = tpu.matmul %52, %1, %cst_20 {dimension_numbers = #tpu.dot_dimension_numbers<[1], [0], [0], [1], [0, 0, 1, 1], [], []>} : vector<2x32xf32>, vector<32x128xf32>, vector<2x128xf32> -> vector<2x128xf32>
    %56 = arith.addf %54, %55 : vector<2x128xf32>
    %57 = arith.negf %56 : vector<2x128xf32>
    %58 = math.exp %57 : vector<2x128xf32>
    %cst_21 = arith.constant 1.000000e+00 : f32
    %59 = vector.broadcast %cst_21 : f32 to vector<2x128xf32>
    %60 = arith.addf %59, %58 : vector<2x128xf32>
    %61 = arith.divf %59, %60 : vector<2x128xf32>
    %62 = vector.extract_strided_slice %61 {offsets = [0, 0], sizes = [2, 32], strides = [1, 1]} : vector<2x128xf32> to vector<2x32xf32>
    %63 = vector.extract_strided_slice %61 {offsets = [0, 32], sizes = [2, 32], strides = [1, 1]} : vector<2x128xf32> to vector<2x32xf32>
    %64 = vector.extract_strided_slice %61 {offsets = [0, 64], sizes = [2, 32], strides = [1, 1]} : vector<2x128xf32> to vector<2x32xf32>
    %cst_22 = arith.constant 2.000000e+00 : f32
    %65 = vector.broadcast %cst_22 : f32 to vector<2x32xf32>
    %66 = arith.mulf %65, %64 : vector<2x32xf32>
    %cst_23 = arith.constant 1.000000e+00 : f32
    %67 = vector.broadcast %cst_23 : f32 to vector<2x32xf32>
    %68 = arith.subf %66, %67 : vector<2x32xf32>
    %69 = vector.extract_strided_slice %61 {offsets = [0, 96], sizes = [2, 32], strides = [1, 1]} : vector<2x128xf32> to vector<2x32xf32>
    %70 = arith.mulf %63, %50 : vector<2x32xf32>
    %71 = arith.mulf %62, %68 : vector<2x32xf32>
    %72 = arith.addf %70, %71 : vector<2x32xf32>
    %73 = math.tanh %72 : vector<2x32xf32>
    %74 = arith.mulf %69, %73 : vector<2x32xf32>
    %c4 = arith.constant 4 : index
    %c0_24 = arith.constant 0 : index
    %75 = vector.load %arg10[%c4, %c0_24] : memref<16x32xf32, #tpu.memory_space<vmem>>, vector<2x32xf32>
    tpu.vector_store %arg10[%c4, %c0_24], %74 {strides = array<i32>} : memref<16x32xf32, #tpu.memory_space<vmem>>, vector<2x32xf32>,
    %76 = vector.extract_strided_slice %7 {offsets = [6, 0], sizes = [2, 128], strides = [1, 1]} : vector<16x128xf32> to vector<2x128xf32>
    %cst_25 = arith.constant dense<0.000000e+00> : vector<2x128xf32>
    %77 = tpu.matmul %74, %1, %cst_25 {dimension_numbers = #tpu.dot_dimension_numbers<[1], [0], [0], [1], [0, 0, 1, 1], [], []>} : vector<2x32xf32>, vector<32x128xf32>, vector<2x128xf32> -> vector<2x128xf32>
    %78 = arith.addf %76, %77 : vector<2x128xf32>
    %79 = arith.negf %78 : vector<2x128xf32>
    %80 = math.exp %79 : vector<2x128xf32>
    %cst_26 = arith.constant 1.000000e+00 : f32
    %81 = vector.broadcast %cst_26 : f32 to vector<2x128xf32>
    %82 = arith.addf %81, %80 : vector<2x128xf32>
    %83 = arith.divf %81, %82 : vector<2x128xf32>
    %84 = vector.extract_strided_slice %83 {offsets = [0, 0], sizes = [2, 32], strides = [1, 1]} : vector<2x128xf32> to vector<2x32xf32>
    %85 = vector.extract_strided_slice %83 {offsets = [0, 32], sizes = [2, 32], strides = [1, 1]} : vector<2x128xf32> to vector<2x32xf32>
    %86 = vector.extract_strided_slice %83 {offsets = [0, 64], sizes = [2, 32], strides = [1, 1]} : vector<2x128xf32> to vector<2x32xf32>
    %cst_27 = arith.constant 2.000000e+00 : f32
    %87 = vector.broadcast %cst_27 : f32 to vector<2x32xf32>
    %88 = arith.mulf %87, %86 : vector<2x32xf32>
    %cst_28 = arith.constant 1.000000e+00 : f32
    %89 = vector.broadcast %cst_28 : f32 to vector<2x32xf32>
    %90 = arith.subf %88, %89 : vector<2x32xf32>
    %91 = vector.extract_strided_slice %83 {offsets = [0, 96], sizes = [2, 32], strides = [1, 1]} : vector<2x128xf32> to vector<2x32xf32>
    %92 = arith.mulf %85, %72 : vector<2x32xf32>
    %93 = arith.mulf %84, %90 : vector<2x32xf32>
    %94 = arith.addf %92, %93 : vector<2x32xf32>
    %95 = math.tanh %94 : vector<2x32xf32>
    %96 = arith.mulf %91, %95 : vector<2x32xf32>
    %c6 = arith.constant 6 : index
    %c0_29 = arith.constant 0 : index
    %97 = vector.load %arg10[%c6, %c0_29] : memref<16x32xf32, #tpu.memory_space<vmem>>, vector<2x32xf32>
    tpu.vector_store %arg10[%c6, %c0_29], %96 {strides = array<i32>} : memref<16x32xf32, #tpu.memory_space<vmem>>, vector<2x32xf32>,
    %98 = vector.extract_strided_slice %7 {offsets = [8, 0], sizes = [2, 128], strides = [1, 1]} : vector<16x128xf32> to vector<2x128xf32>
    %cst_30 = arith.constant dense<0.000000e+00> : vector<2x128xf32>
    %99 = tpu.matmul %96, %1, %cst_30 {dimension_numbers = #tpu.dot_dimension_numbers<[1], [0], [0], [1], [0, 0, 1, 1], [], []>} : vector<2x32xf32>, vector<32x128xf32>, vector<2x128xf32> -> vector<2x128xf32>
    %100 = arith.addf %98, %99 : vector<2x128xf32>
    %101 = arith.negf %100 : vector<2x128xf32>
    %102 = math.exp %101 : vector<2x128xf32>
    %cst_31 = arith.constant 1.000000e+00 : f32
    %103 = vector.broadcast %cst_31 : f32 to vector<2x128xf32>
    %104 = arith.addf %103, %102 : vector<2x128xf32>
    %105 = arith.divf %103, %104 : vector<2x128xf32>
    %106 = vector.extract_strided_slice %105 {offsets = [0, 0], sizes = [2, 32], strides = [1, 1]} : vector<2x128xf32> to vector<2x32xf32>
    %107 = vector.extract_strided_slice %105 {offsets = [0, 32], sizes = [2, 32], strides = [1, 1]} : vector<2x128xf32> to vector<2x32xf32>
    %108 = vector.extract_strided_slice %105 {offsets = [0, 64], sizes = [2, 32], strides = [1, 1]} : vector<2x128xf32> to vector<2x32xf32>
    %cst_32 = arith.constant 2.000000e+00 : f32
    %109 = vector.broadcast %cst_32 : f32 to vector<2x32xf32>
    %110 = arith.mulf %109, %108 : vector<2x32xf32>
    %cst_33 = arith.constant 1.000000e+00 : f32
    %111 = vector.broadcast %cst_33 : f32 to vector<2x32xf32>
    %112 = arith.subf %110, %111 : vector<2x32xf32>
    %113 = vector.extract_strided_slice %105 {offsets = [0, 96], sizes = [2, 32], strides = [1, 1]} : vector<2x128xf32> to vector<2x32xf32>
    %114 = arith.mulf %107, %94 : vector<2x32xf32>
    %115 = arith.mulf %106, %112 : vector<2x32xf32>
    %116 = arith.addf %114, %115 : vector<2x32xf32>
    %117 = math.tanh %116 : vector<2x32xf32>
    %118 = arith.mulf %113, %117 : vector<2x32xf32>
    %c8 = arith.constant 8 : index
    %c0_34 = arith.constant 0 : index
    %119 = vector.load %arg10[%c8, %c0_34] : memref<16x32xf32, #tpu.memory_space<vmem>>, vector<2x32xf32>
    tpu.vector_store %arg10[%c8, %c0_34], %118 {strides = array<i32>} : memref<16x32xf32, #tpu.memory_space<vmem>>, vector<2x32xf32>,
    %120 = vector.extract_strided_slice %7 {offsets = [10, 0], sizes = [2, 128], strides = [1, 1]} : vector<16x128xf32> to vector<2x128xf32>
    %cst_35 = arith.constant dense<0.000000e+00> : vector<2x128xf32>
    %121 = tpu.matmul %118, %1, %cst_35 {dimension_numbers = #tpu.dot_dimension_numbers<[1], [0], [0], [1], [0, 0, 1, 1], [], []>} : vector<2x32xf32>, vector<32x128xf32>, vector<2x128xf32> -> vector<2x128xf32>
    %122 = arith.addf %120, %121 : vector<2x128xf32>
    %123 = arith.negf %122 : vector<2x128xf32>
    %124 = math.exp %123 : vector<2x128xf32>
    %cst_36 = arith.constant 1.000000e+00 : f32
    %125 = vector.broadcast %cst_36 : f32 to vector<2x128xf32>
    %126 = arith.addf %125, %124 : vector<2x128xf32>
    %127 = arith.divf %125, %126 : vector<2x128xf32>
    %128 = vector.extract_strided_slice %127 {offsets = [0, 0], sizes = [2, 32], strides = [1, 1]} : vector<2x128xf32> to vector<2x32xf32>
    %129 = vector.extract_strided_slice %127 {offsets = [0, 32], sizes = [2, 32], strides = [1, 1]} : vector<2x128xf32> to vector<2x32xf32>
    %130 = vector.extract_strided_slice %127 {offsets = [0, 64], sizes = [2, 32], strides = [1, 1]} : vector<2x128xf32> to vector<2x32xf32>
    %cst_37 = arith.constant 2.000000e+00 : f32
    %131 = vector.broadcast %cst_37 : f32 to vector<2x32xf32>
    %132 = arith.mulf %131, %130 : vector<2x32xf32>
    %cst_38 = arith.constant 1.000000e+00 : f32
    %133 = vector.broadcast %cst_38 : f32 to vector<2x32xf32>
    %134 = arith.subf %132, %133 : vector<2x32xf32>
    %135 = vector.extract_strided_slice %127 {offsets = [0, 96], sizes = [2, 32], strides = [1, 1]} : vector<2x128xf32> to vector<2x32xf32>
    %136 = arith.mulf %129, %116 : vector<2x32xf32>
    %137 = arith.mulf %128, %134 : vector<2x32xf32>
    %138 = arith.addf %136, %137 : vector<2x32xf32>
    %139 = math.tanh %138 : vector<2x32xf32>
    %140 = arith.mulf %135, %139 : vector<2x32xf32>
    %c10 = arith.constant 10 : index
    %c0_39 = arith.constant 0 : index
    %141 = vector.load %arg10[%c10, %c0_39] : memref<16x32xf32, #tpu.memory_space<vmem>>, vector<2x32xf32>
    tpu.vector_store %arg10[%c10, %c0_39], %140 {strides = array<i32>} : memref<16x32xf32, #tpu.memory_space<vmem>>, vector<2x32xf32>,
    %142 = vector.extract_strided_slice %7 {offsets = [12, 0], sizes = [2, 128], strides = [1, 1]} : vector<16x128xf32> to vector<2x128xf32>
    %cst_40 = arith.constant dense<0.000000e+00> : vector<2x128xf32>
    %143 = tpu.matmul %140, %1, %cst_40 {dimension_numbers = #tpu.dot_dimension_numbers<[1], [0], [0], [1], [0, 0, 1, 1], [], []>} : vector<2x32xf32>, vector<32x128xf32>, vector<2x128xf32> -> vector<2x128xf32>
    %144 = arith.addf %142, %143 : vector<2x128xf32>
    %145 = arith.negf %144 : vector<2x128xf32>
    %146 = math.exp %145 : vector<2x128xf32>
    %cst_41 = arith.constant 1.000000e+00 : f32
    %147 = vector.broadcast %cst_41 : f32 to vector<2x128xf32>
    %148 = arith.addf %147, %146 : vector<2x128xf32>
    %149 = arith.divf %147, %148 : vector<2x128xf32>
    %150 = vector.extract_strided_slice %149 {offsets = [0, 0], sizes = [2, 32], strides = [1, 1]} : vector<2x128xf32> to vector<2x32xf32>
    %151 = vector.extract_strided_slice %149 {offsets = [0, 32], sizes = [2, 32], strides = [1, 1]} : vector<2x128xf32> to vector<2x32xf32>
    %152 = vector.extract_strided_slice %149 {offsets = [0, 64], sizes = [2, 32], strides = [1, 1]} : vector<2x128xf32> to vector<2x32xf32>
    %cst_42 = arith.constant 2.000000e+00 : f32
    %153 = vector.broadcast %cst_42 : f32 to vector<2x32xf32>
    %154 = arith.mulf %153, %152 : vector<2x32xf32>
    %cst_43 = arith.constant 1.000000e+00 : f32
    %155 = vector.broadcast %cst_43 : f32 to vector<2x32xf32>
    %156 = arith.subf %154, %155 : vector<2x32xf32>
    %157 = vector.extract_strided_slice %149 {offsets = [0, 96], sizes = [2, 32], strides = [1, 1]} : vector<2x128xf32> to vector<2x32xf32>
    %158 = arith.mulf %151, %138 : vector<2x32xf32>
    %159 = arith.mulf %150, %156 : vector<2x32xf32>
    %160 = arith.addf %158, %159 : vector<2x32xf32>
    %161 = math.tanh %160 : vector<2x32xf32>
    %162 = arith.mulf %157, %161 : vector<2x32xf32>
    %c12 = arith.constant 12 : index
    %c0_44 = arith.constant 0 : index
    %163 = vector.load %arg10[%c12, %c0_44] : memref<16x32xf32, #tpu.memory_space<vmem>>, vector<2x32xf32>
    tpu.vector_store %arg10[%c12, %c0_44], %162 {strides = array<i32>} : memref<16x32xf32, #tpu.memory_space<vmem>>, vector<2x32xf32>,
    %164 = vector.extract_strided_slice %7 {offsets = [14, 0], sizes = [2, 128], strides = [1, 1]} : vector<16x128xf32> to vector<2x128xf32>
    %cst_45 = arith.constant dense<0.000000e+00> : vector<2x128xf32>
    %165 = tpu.matmul %162, %1, %cst_45 {dimension_numbers = #tpu.dot_dimension_numbers<[1], [0], [0], [1], [0, 0, 1, 1], [], []>} : vector<2x32xf32>, vector<32x128xf32>, vector<2x128xf32> -> vector<2x128xf32>
    %166 = arith.addf %164, %165 : vector<2x128xf32>
    %167 = arith.negf %166 : vector<2x128xf32>
    %168 = math.exp %167 : vector<2x128xf32>
    %cst_46 = arith.constant 1.000000e+00 : f32
    %169 = vector.broadcast %cst_46 : f32 to vector<2x128xf32>
    %170 = arith.addf %169, %168 : vector<2x128xf32>
    %171 = arith.divf %169, %170 : vector<2x128xf32>
    %172 = vector.extract_strided_slice %171 {offsets = [0, 0], sizes = [2, 32], strides = [1, 1]} : vector<2x128xf32> to vector<2x32xf32>
    %173 = vector.extract_strided_slice %171 {offsets = [0, 32], sizes = [2, 32], strides = [1, 1]} : vector<2x128xf32> to vector<2x32xf32>
    %174 = vector.extract_strided_slice %171 {offsets = [0, 64], sizes = [2, 32], strides = [1, 1]} : vector<2x128xf32> to vector<2x32xf32>
    %cst_47 = arith.constant 2.000000e+00 : f32
    %175 = vector.broadcast %cst_47 : f32 to vector<2x32xf32>
    %176 = arith.mulf %175, %174 : vector<2x32xf32>
    %cst_48 = arith.constant 1.000000e+00 : f32
    %177 = vector.broadcast %cst_48 : f32 to vector<2x32xf32>
    %178 = arith.subf %176, %177 : vector<2x32xf32>
    %179 = vector.extract_strided_slice %171 {offsets = [0, 96], sizes = [2, 32], strides = [1, 1]} : vector<2x128xf32> to vector<2x32xf32>
    %180 = arith.mulf %173, %160 : vector<2x32xf32>
    %181 = arith.mulf %172, %178 : vector<2x32xf32>
    %182 = arith.addf %180, %181 : vector<2x32xf32>
    %183 = math.tanh %182 : vector<2x32xf32>
    %184 = arith.mulf %179, %183 : vector<2x32xf32>
    %c14 = arith.constant 14 : index
    %c0_49 = arith.constant 0 : index
    %185 = vector.load %arg10[%c14, %c0_49] : memref<16x32xf32, #tpu.memory_space<vmem>>, vector<2x32xf32>
    tpu.vector_store %arg10[%c14, %c0_49], %184 {strides = array<i32>} : memref<16x32xf32, #tpu.memory_space<vmem>>, vector<2x32xf32>,
    %c0_50 = arith.constant 0 : index
    %c0_51 = arith.constant 0 : index
    %186 = vector.load %arg4[%c0_50, %c0_51] : memref<32x128xf32, #tpu.memory_space<vmem>>, vector<32x128xf32>
    %c0_52 = arith.constant 0 : index
    %c0_53 = arith.constant 0 : index
    %187 = vector.load %arg5[%c0_52, %c0_53] : memref<32x128xf32, #tpu.memory_space<vmem>>, vector<32x128xf32>
    %c0_54 = arith.constant 0 : index
    %c0_55 = arith.constant 0 : index
    %188 = vector.load %arg6[%c0_54, %c0_55] : memref<1x128xf32, #tpu.memory_space<vmem>>, vector<1x128xf32>
    %c0_56 = arith.constant 0 : index
    %c0_57 = arith.constant 0 : index
    %189 = vector.load %arg10[%c0_56, %c0_57] : memref<16x32xf32, #tpu.memory_space<vmem>>, vector<16x32xf32>
    %cst_58 = arith.constant dense<0.000000e+00> : vector<16x128xf32>
    %190 = tpu.matmul %189, %186, %cst_58 {dimension_numbers = #tpu.dot_dimension_numbers<[1], [0], [0], [1], [0, 0, 1, 1], [], []>} : vector<16x32xf32>, vector<32x128xf32>, vector<16x128xf32> -> vector<16x128xf32>
    %191 = vector.shape_cast %188 : vector<1x128xf32> to vector<1x128xf32>
    %192 = vector.broadcast %191 : vector<1x128xf32> to vector<16x128xf32>
    %193 = arith.addf %190, %192 : vector<16x128xf32>
    %cst_59 = arith.constant 0.000000e+00 : f32
    %194 = vector.broadcast %cst_59 : f32 to vector<2x32xf32>
    %cst_60 = arith.constant 0.000000e+00 : f32
    %195 = vector.broadcast %cst_60 : f32 to vector<2x32xf32>
    %196 = vector.extract_strided_slice %193 {offsets = [0, 0], sizes = [2, 128], strides = [1, 1]} : vector<16x128xf32> to vector<2x128xf32>
    %cst_61 = arith.constant dense<0.000000e+00> : vector<2x128xf32>
    %197 = tpu.matmul %194, %187, %cst_61 {dimension_numbers = #tpu.dot_dimension_numbers<[1], [0], [0], [1], [0, 0, 1, 1], [], []>} : vector<2x32xf32>, vector<32x128xf32>, vector<2x128xf32> -> vector<2x128xf32>
    %198 = arith.addf %196, %197 : vector<2x128xf32>
    %199 = arith.negf %198 : vector<2x128xf32>
    %200 = math.exp %199 : vector<2x128xf32>
    %cst_62 = arith.constant 1.000000e+00 : f32
    %201 = vector.broadcast %cst_62 : f32 to vector<2x128xf32>
    %202 = arith.addf %201, %200 : vector<2x128xf32>
    %203 = arith.divf %201, %202 : vector<2x128xf32>
    %204 = vector.extract_strided_slice %203 {offsets = [0, 0], sizes = [2, 32], strides = [1, 1]} : vector<2x128xf32> to vector<2x32xf32>
    %205 = vector.extract_strided_slice %203 {offsets = [0, 32], sizes = [2, 32], strides = [1, 1]} : vector<2x128xf32> to vector<2x32xf32>
    %206 = vector.extract_strided_slice %203 {offsets = [0, 64], sizes = [2, 32], strides = [1, 1]} : vector<2x128xf32> to vector<2x32xf32>
    %cst_63 = arith.constant 2.000000e+00 : f32
    %207 = vector.broadcast %cst_63 : f32 to vector<2x32xf32>
    %208 = arith.mulf %207, %206 : vector<2x32xf32>
    %cst_64 = arith.constant 1.000000e+00 : f32
    %209 = vector.broadcast %cst_64 : f32 to vector<2x32xf32>
    %210 = arith.subf %208, %209 : vector<2x32xf32>
    %211 = vector.extract_strided_slice %203 {offsets = [0, 96], sizes = [2, 32], strides = [1, 1]} : vector<2x128xf32> to vector<2x32xf32>
    %212 = arith.mulf %205, %195 : vector<2x32xf32>
    %213 = arith.mulf %204, %210 : vector<2x32xf32>
    %214 = arith.addf %212, %213 : vector<2x32xf32>
    %215 = math.tanh %214 : vector<2x32xf32>
    %216 = arith.mulf %211, %215 : vector<2x32xf32>
    %217 = vector.extract_strided_slice %193 {offsets = [2, 0], sizes = [2, 128], strides = [1, 1]} : vector<16x128xf32> to vector<2x128xf32>
    %cst_65 = arith.constant dense<0.000000e+00> : vector<2x128xf32>
    %218 = tpu.matmul %216, %187, %cst_65 {dimension_numbers = #tpu.dot_dimension_numbers<[1], [0], [0], [1], [0, 0, 1, 1], [], []>} : vector<2x32xf32>, vector<32x128xf32>, vector<2x128xf32> -> vector<2x128xf32>
    %219 = arith.addf %217, %218 : vector<2x128xf32>
    %220 = arith.negf %219 : vector<2x128xf32>
    %221 = math.exp %220 : vector<2x128xf32>
    %cst_66 = arith.constant 1.000000e+00 : f32
    %222 = vector.broadcast %cst_66 : f32 to vector<2x128xf32>
    %223 = arith.addf %222, %221 : vector<2x128xf32>
    %224 = arith.divf %222, %223 : vector<2x128xf32>
    %225 = vector.extract_strided_slice %224 {offsets = [0, 0], sizes = [2, 32], strides = [1, 1]} : vector<2x128xf32> to vector<2x32xf32>
    %226 = vector.extract_strided_slice %224 {offsets = [0, 32], sizes = [2, 32], strides = [1, 1]} : vector<2x128xf32> to vector<2x32xf32>
    %227 = vector.extract_strided_slice %224 {offsets = [0, 64], sizes = [2, 32], strides = [1, 1]} : vector<2x128xf32> to vector<2x32xf32>
    %cst_67 = arith.constant 2.000000e+00 : f32
    %228 = vector.broadcast %cst_67 : f32 to vector<2x32xf32>
    %229 = arith.mulf %228, %227 : vector<2x32xf32>
    %cst_68 = arith.constant 1.000000e+00 : f32
    %230 = vector.broadcast %cst_68 : f32 to vector<2x32xf32>
    %231 = arith.subf %229, %230 : vector<2x32xf32>
    %232 = vector.extract_strided_slice %224 {offsets = [0, 96], sizes = [2, 32], strides = [1, 1]} : vector<2x128xf32> to vector<2x32xf32>
    %233 = arith.mulf %226, %214 : vector<2x32xf32>
    %234 = arith.mulf %225, %231 : vector<2x32xf32>
    %235 = arith.addf %233, %234 : vector<2x32xf32>
    %236 = math.tanh %235 : vector<2x32xf32>
    %237 = arith.mulf %232, %236 : vector<2x32xf32>
    %238 = vector.extract_strided_slice %193 {offsets = [4, 0], sizes = [2, 128], strides = [1, 1]} : vector<16x128xf32> to vector<2x128xf32>
    %cst_69 = arith.constant dense<0.000000e+00> : vector<2x128xf32>
    %239 = tpu.matmul %237, %187, %cst_69 {dimension_numbers = #tpu.dot_dimension_numbers<[1], [0], [0], [1], [0, 0, 1, 1], [], []>} : vector<2x32xf32>, vector<32x128xf32>, vector<2x128xf32> -> vector<2x128xf32>
    %240 = arith.addf %238, %239 : vector<2x128xf32>
    %241 = arith.negf %240 : vector<2x128xf32>
    %242 = math.exp %241 : vector<2x128xf32>
    %cst_70 = arith.constant 1.000000e+00 : f32
    %243 = vector.broadcast %cst_70 : f32 to vector<2x128xf32>
    %244 = arith.addf %243, %242 : vector<2x128xf32>
    %245 = arith.divf %243, %244 : vector<2x128xf32>
    %246 = vector.extract_strided_slice %245 {offsets = [0, 0], sizes = [2, 32], strides = [1, 1]} : vector<2x128xf32> to vector<2x32xf32>
    %247 = vector.extract_strided_slice %245 {offsets = [0, 32], sizes = [2, 32], strides = [1, 1]} : vector<2x128xf32> to vector<2x32xf32>
    %248 = vector.extract_strided_slice %245 {offsets = [0, 64], sizes = [2, 32], strides = [1, 1]} : vector<2x128xf32> to vector<2x32xf32>
    %cst_71 = arith.constant 2.000000e+00 : f32
    %249 = vector.broadcast %cst_71 : f32 to vector<2x32xf32>
    %250 = arith.mulf %249, %248 : vector<2x32xf32>
    %cst_72 = arith.constant 1.000000e+00 : f32
    %251 = vector.broadcast %cst_72 : f32 to vector<2x32xf32>
    %252 = arith.subf %250, %251 : vector<2x32xf32>
    %253 = vector.extract_strided_slice %245 {offsets = [0, 96], sizes = [2, 32], strides = [1, 1]} : vector<2x128xf32> to vector<2x32xf32>
    %254 = arith.mulf %247, %235 : vector<2x32xf32>
    %255 = arith.mulf %246, %252 : vector<2x32xf32>
    %256 = arith.addf %254, %255 : vector<2x32xf32>
    %257 = math.tanh %256 : vector<2x32xf32>
    %258 = arith.mulf %253, %257 : vector<2x32xf32>
    %259 = vector.extract_strided_slice %193 {offsets = [6, 0], sizes = [2, 128], strides = [1, 1]} : vector<16x128xf32> to vector<2x128xf32>
    %cst_73 = arith.constant dense<0.000000e+00> : vector<2x128xf32>
    %260 = tpu.matmul %258, %187, %cst_73 {dimension_numbers = #tpu.dot_dimension_numbers<[1], [0], [0], [1], [0, 0, 1, 1], [], []>} : vector<2x32xf32>, vector<32x128xf32>, vector<2x128xf32> -> vector<2x128xf32>
    %261 = arith.addf %259, %260 : vector<2x128xf32>
    %262 = arith.negf %261 : vector<2x128xf32>
    %263 = math.exp %262 : vector<2x128xf32>
    %cst_74 = arith.constant 1.000000e+00 : f32
    %264 = vector.broadcast %cst_74 : f32 to vector<2x128xf32>
    %265 = arith.addf %264, %263 : vector<2x128xf32>
    %266 = arith.divf %264, %265 : vector<2x128xf32>
    %267 = vector.extract_strided_slice %266 {offsets = [0, 0], sizes = [2, 32], strides = [1, 1]} : vector<2x128xf32> to vector<2x32xf32>
    %268 = vector.extract_strided_slice %266 {offsets = [0, 32], sizes = [2, 32], strides = [1, 1]} : vector<2x128xf32> to vector<2x32xf32>
    %269 = vector.extract_strided_slice %266 {offsets = [0, 64], sizes = [2, 32], strides = [1, 1]} : vector<2x128xf32> to vector<2x32xf32>
    %cst_75 = arith.constant 2.000000e+00 : f32
    %270 = vector.broadcast %cst_75 : f32 to vector<2x32xf32>
    %271 = arith.mulf %270, %269 : vector<2x32xf32>
    %cst_76 = arith.constant 1.000000e+00 : f32
    %272 = vector.broadcast %cst_76 : f32 to vector<2x32xf32>
    %273 = arith.subf %271, %272 : vector<2x32xf32>
    %274 = vector.extract_strided_slice %266 {offsets = [0, 96], sizes = [2, 32], strides = [1, 1]} : vector<2x128xf32> to vector<2x32xf32>
    %275 = arith.mulf %268, %256 : vector<2x32xf32>
    %276 = arith.mulf %267, %273 : vector<2x32xf32>
    %277 = arith.addf %275, %276 : vector<2x32xf32>
    %278 = math.tanh %277 : vector<2x32xf32>
    %279 = arith.mulf %274, %278 : vector<2x32xf32>
    %280 = vector.extract_strided_slice %193 {offsets = [8, 0], sizes = [2, 128], strides = [1, 1]} : vector<16x128xf32> to vector<2x128xf32>
    %cst_77 = arith.constant dense<0.000000e+00> : vector<2x128xf32>
    %281 = tpu.matmul %279, %187, %cst_77 {dimension_numbers = #tpu.dot_dimension_numbers<[1], [0], [0], [1], [0, 0, 1, 1], [], []>} : vector<2x32xf32>, vector<32x128xf32>, vector<2x128xf32> -> vector<2x128xf32>
    %282 = arith.addf %280, %281 : vector<2x128xf32>
    %283 = arith.negf %282 : vector<2x128xf32>
    %284 = math.exp %283 : vector<2x128xf32>
    %cst_78 = arith.constant 1.000000e+00 : f32
    %285 = vector.broadcast %cst_78 : f32 to vector<2x128xf32>
    %286 = arith.addf %285, %284 : vector<2x128xf32>
    %287 = arith.divf %285, %286 : vector<2x128xf32>
    %288 = vector.extract_strided_slice %287 {offsets = [0, 0], sizes = [2, 32], strides = [1, 1]} : vector<2x128xf32> to vector<2x32xf32>
    %289 = vector.extract_strided_slice %287 {offsets = [0, 32], sizes = [2, 32], strides = [1, 1]} : vector<2x128xf32> to vector<2x32xf32>
    %290 = vector.extract_strided_slice %287 {offsets = [0, 64], sizes = [2, 32], strides = [1, 1]} : vector<2x128xf32> to vector<2x32xf32>
    %cst_79 = arith.constant 2.000000e+00 : f32
    %291 = vector.broadcast %cst_79 : f32 to vector<2x32xf32>
    %292 = arith.mulf %291, %290 : vector<2x32xf32>
    %cst_80 = arith.constant 1.000000e+00 : f32
    %293 = vector.broadcast %cst_80 : f32 to vector<2x32xf32>
    %294 = arith.subf %292, %293 : vector<2x32xf32>
    %295 = vector.extract_strided_slice %287 {offsets = [0, 96], sizes = [2, 32], strides = [1, 1]} : vector<2x128xf32> to vector<2x32xf32>
    %296 = arith.mulf %289, %277 : vector<2x32xf32>
    %297 = arith.mulf %288, %294 : vector<2x32xf32>
    %298 = arith.addf %296, %297 : vector<2x32xf32>
    %299 = math.tanh %298 : vector<2x32xf32>
    %300 = arith.mulf %295, %299 : vector<2x32xf32>
    %301 = vector.extract_strided_slice %193 {offsets = [10, 0], sizes = [2, 128], strides = [1, 1]} : vector<16x128xf32> to vector<2x128xf32>
    %cst_81 = arith.constant dense<0.000000e+00> : vector<2x128xf32>
    %302 = tpu.matmul %300, %187, %cst_81 {dimension_numbers = #tpu.dot_dimension_numbers<[1], [0], [0], [1], [0, 0, 1, 1], [], []>} : vector<2x32xf32>, vector<32x128xf32>, vector<2x128xf32> -> vector<2x128xf32>
    %303 = arith.addf %301, %302 : vector<2x128xf32>
    %304 = arith.negf %303 : vector<2x128xf32>
    %305 = math.exp %304 : vector<2x128xf32>
    %cst_82 = arith.constant 1.000000e+00 : f32
    %306 = vector.broadcast %cst_82 : f32 to vector<2x128xf32>
    %307 = arith.addf %306, %305 : vector<2x128xf32>
    %308 = arith.divf %306, %307 : vector<2x128xf32>
    %309 = vector.extract_strided_slice %308 {offsets = [0, 0], sizes = [2, 32], strides = [1, 1]} : vector<2x128xf32> to vector<2x32xf32>
    %310 = vector.extract_strided_slice %308 {offsets = [0, 32], sizes = [2, 32], strides = [1, 1]} : vector<2x128xf32> to vector<2x32xf32>
    %311 = vector.extract_strided_slice %308 {offsets = [0, 64], sizes = [2, 32], strides = [1, 1]} : vector<2x128xf32> to vector<2x32xf32>
    %cst_83 = arith.constant 2.000000e+00 : f32
    %312 = vector.broadcast %cst_83 : f32 to vector<2x32xf32>
    %313 = arith.mulf %312, %311 : vector<2x32xf32>
    %cst_84 = arith.constant 1.000000e+00 : f32
    %314 = vector.broadcast %cst_84 : f32 to vector<2x32xf32>
    %315 = arith.subf %313, %314 : vector<2x32xf32>
    %316 = vector.extract_strided_slice %308 {offsets = [0, 96], sizes = [2, 32], strides = [1, 1]} : vector<2x128xf32> to vector<2x32xf32>
    %317 = arith.mulf %310, %298 : vector<2x32xf32>
    %318 = arith.mulf %309, %315 : vector<2x32xf32>
    %319 = arith.addf %317, %318 : vector<2x32xf32>
    %320 = math.tanh %319 : vector<2x32xf32>
    %321 = arith.mulf %316, %320 : vector<2x32xf32>
    %322 = vector.extract_strided_slice %193 {offsets = [12, 0], sizes = [2, 128], strides = [1, 1]} : vector<16x128xf32> to vector<2x128xf32>
    %cst_85 = arith.constant dense<0.000000e+00> : vector<2x128xf32>
    %323 = tpu.matmul %321, %187, %cst_85 {dimension_numbers = #tpu.dot_dimension_numbers<[1], [0], [0], [1], [0, 0, 1, 1], [], []>} : vector<2x32xf32>, vector<32x128xf32>, vector<2x128xf32> -> vector<2x128xf32>
    %324 = arith.addf %322, %323 : vector<2x128xf32>
    %325 = arith.negf %324 : vector<2x128xf32>
    %326 = math.exp %325 : vector<2x128xf32>
    %cst_86 = arith.constant 1.000000e+00 : f32
    %327 = vector.broadcast %cst_86 : f32 to vector<2x128xf32>
    %328 = arith.addf %327, %326 : vector<2x128xf32>
    %329 = arith.divf %327, %328 : vector<2x128xf32>
    %330 = vector.extract_strided_slice %329 {offsets = [0, 0], sizes = [2, 32], strides = [1, 1]} : vector<2x128xf32> to vector<2x32xf32>
    %331 = vector.extract_strided_slice %329 {offsets = [0, 32], sizes = [2, 32], strides = [1, 1]} : vector<2x128xf32> to vector<2x32xf32>
    %332 = vector.extract_strided_slice %329 {offsets = [0, 64], sizes = [2, 32], strides = [1, 1]} : vector<2x128xf32> to vector<2x32xf32>
    %cst_87 = arith.constant 2.000000e+00 : f32
    %333 = vector.broadcast %cst_87 : f32 to vector<2x32xf32>
    %334 = arith.mulf %333, %332 : vector<2x32xf32>
    %cst_88 = arith.constant 1.000000e+00 : f32
    %335 = vector.broadcast %cst_88 : f32 to vector<2x32xf32>
    %336 = arith.subf %334, %335 : vector<2x32xf32>
    %337 = vector.extract_strided_slice %329 {offsets = [0, 96], sizes = [2, 32], strides = [1, 1]} : vector<2x128xf32> to vector<2x32xf32>
    %338 = arith.mulf %331, %319 : vector<2x32xf32>
    %339 = arith.mulf %330, %336 : vector<2x32xf32>
    %340 = arith.addf %338, %339 : vector<2x32xf32>
    %341 = math.tanh %340 : vector<2x32xf32>
    %342 = arith.mulf %337, %341 : vector<2x32xf32>
    %343 = vector.extract_strided_slice %193 {offsets = [14, 0], sizes = [2, 128], strides = [1, 1]} : vector<16x128xf32> to vector<2x128xf32>
    %cst_89 = arith.constant dense<0.000000e+00> : vector<2x128xf32>
    %344 = tpu.matmul %342, %187, %cst_89 {dimension_numbers = #tpu.dot_dimension_numbers<[1], [0], [0], [1], [0, 0, 1, 1], [], []>} : vector<2x32xf32>, vector<32x128xf32>, vector<2x128xf32> -> vector<2x128xf32>
    %345 = arith.addf %343, %344 : vector<2x128xf32>
    %346 = arith.negf %345 : vector<2x128xf32>
    %347 = math.exp %346 : vector<2x128xf32>
    %cst_90 = arith.constant 1.000000e+00 : f32
    %348 = vector.broadcast %cst_90 : f32 to vector<2x128xf32>
    %349 = arith.addf %348, %347 : vector<2x128xf32>
    %350 = arith.divf %348, %349 : vector<2x128xf32>
    %351 = vector.extract_strided_slice %350 {offsets = [0, 0], sizes = [2, 32], strides = [1, 1]} : vector<2x128xf32> to vector<2x32xf32>
    %352 = vector.extract_strided_slice %350 {offsets = [0, 32], sizes = [2, 32], strides = [1, 1]} : vector<2x128xf32> to vector<2x32xf32>
    %353 = vector.extract_strided_slice %350 {offsets = [0, 64], sizes = [2, 32], strides = [1, 1]} : vector<2x128xf32> to vector<2x32xf32>
    %cst_91 = arith.constant 2.000000e+00 : f32
    %354 = vector.broadcast %cst_91 : f32 to vector<2x32xf32>
    %355 = arith.mulf %354, %353 : vector<2x32xf32>
    %cst_92 = arith.constant 1.000000e+00 : f32
    %356 = vector.broadcast %cst_92 : f32 to vector<2x32xf32>
    %357 = arith.subf %355, %356 : vector<2x32xf32>
    %358 = vector.extract_strided_slice %350 {offsets = [0, 96], sizes = [2, 32], strides = [1, 1]} : vector<2x128xf32> to vector<2x32xf32>
    %359 = arith.mulf %352, %340 : vector<2x32xf32>
    %360 = arith.mulf %351, %357 : vector<2x32xf32>
    %361 = arith.addf %359, %360 : vector<2x32xf32>
    %362 = math.tanh %361 : vector<2x32xf32>
    %363 = arith.mulf %358, %362 : vector<2x32xf32>
    %c0_93 = arith.constant 0 : index
    %c0_94 = arith.constant 0 : index
    %364 = vector.load %arg7[%c0_93, %c0_94] : memref<1x32xf32, #tpu.memory_space<vmem>>, vector<1x32xf32>
    %c0_95 = arith.constant 0 : index
    %c0_96 = arith.constant 0 : index
    %365 = vector.load %arg8[%c0_95, %c0_96] : memref<1x1xf32, #tpu.memory_space<vmem>>, vector<1x1xf32>
    %366 = vector.broadcast %364 : vector<1x32xf32> to vector<2x32xf32>
    %367 = arith.mulf %363, %366 : vector<2x32xf32>
    %cst_97 = arith.constant dense<0.000000e+00> : vector<2xf32>
    %368 = vector.multi_reduction <add>, %367, %cst_97 [1] : vector<2x32xf32> to vector<2xf32>
    %369 = vector.shape_cast %368 : vector<2xf32> to vector<2x1xf32>
    %370 = vector.broadcast %365 : vector<1x1xf32> to vector<2x1xf32>
    %371 = arith.addf %369, %370 : vector<2x1xf32>
    %c0_98 = arith.constant 0 : index
    %c0_99 = arith.constant 0 : index
    %372 = vector.load %arg9[%c0_98, %c0_99] : memref<2x1xf32, #tpu.memory_space<vmem>>, vector<2x1xf32>
    tpu.vector_store %arg9[%c0_98, %c0_99], %371 {strides = array<i32>} : memref<2x1xf32, #tpu.memory_space<vmem>>, vector<2x1xf32>,
    return
  }
}

</mosaic_0001>

<bundles_post_ra>
// kernel: tpu_custom_call.1
= control target key start
LH: loop header
LB: loop body
LE: loop exit
PB: predicated region body
PF: predicated region fallthrough
CT: control target
= control target key end

     0   :  { %s2978_s0 = inlined_call_operand.vmem [shape: f32[16,4], index: 0, kind: input, shape index: {}]   ;;  %s2979_s1 = inlined_call_operand.vmem [shape: f32[4,128], index: 1, kind: input, shape index: {}]   ;;  %s2980_s2 = inlined_call_operand.hbm [shape: f32[32,128], index: 2, kind: input, shape index: {}]   ;;  %s2981_s3 = inlined_call_operand.vmem [shape: f32[1,128], index: 3, kind: input, shape index: {}]   ;;  %s2982_s4 = inlined_call_operand.vmem [shape: f32[32,128], index: 4, kind: input, shape index: {}]   ;;  %s2983_s5 = inlined_call_operand.hbm [shape: f32[32,128], index: 5, kind: input, shape index: {}]   ;;  %s2984_s6 = inlined_call_operand.vmem [shape: f32[1,128], index: 6, kind: input, shape index: {}]   ;;  %s2985_s7 = inlined_call_operand.vmem [shape: f32[1,32], index: 7, kind: input, shape index: {}]   ;;  %s2986_s8 = inlined_call_operand.<no memory space> [shape: f32[1,1], index: 8, kind: input, shape index: {}]   ;;  %s2987_s9 = inlined_call_operand.vmem [shape: f32[2,1], index: 9, kind: output, shape index: {}]  }
   0x1   :  { %v14_v0 = vstv %s2986_s8 }
   0x2   :  { %15 = vst [vmem:[#allocation3] sm:$0x1] %v14_v0 }
   0x3   :  { %16 = vsyncpa [#allocation5], 0 }
   0x4   :  { %17 = vsyncpa [#allocation7], 0  ;;  %s2618_s11 = smov [#allocation4]   ;;  %s2570_s15 = scalar_lea.hbm %s2980_s2, 512 }
   0x5   :  { %s27_s12 = sshll.u32 %s2618_s11, 4  ;;  %p2571_p0 = scmp.ne.s32.totalorder %s2980_s2, %s2570_s15  ;;  %s28_s12 = int_to_ptr.vmem [resolvable:$true] %s27_s12 }
   0x6   :  { %p2574_p1 = scmp.lt.u32.totalorder %s2570_s15, %s2980_s2 }
   0x8   :  { %p2576_p2 = pnand %p2574_p1, %p2571_p0 }
   0xa   :  { %2579 = shalt.err (!%p2576_p2)
}
   0xb   :  { %s2580_s8 = scalar_lea.vmem %s28_s12, 512  ;;  %p2585_p4 = scmp.lt.s32.totalorder %s28_s12, %s28_s12 }
   0xc   :  { %p2581_p3 = scmp.ne.s32.totalorder %s28_s12, %s2580_s8  ;;  %p2586_p5 = scmp.lt.s32.totalorder %s2580_s8, %s2580_s8 }
   0xe   :  { %p2587_p6 = por %p2586_p5, %p2585_p4 }
  0x10   :  { %p2588_p7 = pnand %p2587_p6, %p2581_p3 }
  0x12   :  { %2591 = shalt.err (!%p2588_p7)
}
  0x13   :  { %s2619_s20 = smov 128   ;;  %s2620_s21 = smov 8  }
  0x14   :  { %33 = dma.hbm_to_vmem [thread:$0]  %s2980_s2, 512, %s28_s12, [#allocation5], %s2619_s20, %s2619_s20, %s2620_s21  }
  0x15   :  { %s2621_s24 = smov [#allocation6]   ;;  %s2592_s28 = scalar_lea.hbm %s2983_s5, 512 }
  0x16   :  { %s43_s25 = sshll.u32 %s2621_s24, 4  ;;  %p2593_p8 = scmp.ne.s32.totalorder %s2983_s5, %s2592_s28  ;;  %s44_s25 = int_to_ptr.vmem [resolvable:$true] %s43_s25 }
  0x17   :  { %p2596_p9 = scmp.lt.u32.totalorder %s2592_s28, %s2983_s5 }
  0x19   :  { %p2598_p10 = pnand %p2596_p9, %p2593_p8 }
  0x1b   :  { %2601 = shalt.err (!%p2598_p10)
}
  0x1c   :  { %s2602_s13 = scalar_lea.vmem %s44_s25, 512  ;;  %p2607_p12 = scmp.lt.s32.totalorder %s44_s25, %s44_s25 }
  0x1d   :  { %p2603_p11 = scmp.ne.s32.totalorder %s44_s25, %s2602_s13  ;;  %p2608_p13 = scmp.lt.s32.totalorder %s2602_s13, %s2602_s13 }
  0x1f   :  { %p2609_p0 = por %p2608_p13, %p2607_p12 }
  0x21   :  { %p2610_p1 = pnand %p2609_p0, %p2603_p11 }
  0x23   :  { %2613 = shalt.err (!%p2610_p1)
}
  0x24   :  { %49 = dma.hbm_to_vmem [thread:$0]  %s2983_s5, 512, %s44_s25, [#allocation7], %s2619_s20, %s2619_s20, %s2620_s21  }
  0x25   :  { %2614 = dma.done.wait [#allocation5], 512  }
  0x26   :  { %2615 = vsyncadd [#allocation5], 4294966784 }
  0x27   :  { %2616 = dma.done.wait [#allocation7], 512  }
  0x28   :  { %2617 = vsyncadd [#allocation7], 4294966784  ;;  %v2622_v1 = vmov 0.0|0.0   ;;  %vm2623_vm0 = vmmov 0   ;;  %v2624_v2 = vmov 0.0   ;;  %vm83_vm1 = vcmask 1043456  }
  0x29   :  { %2360 = vmatprep.subr.bf16.mxu1 %v2622_v1  ;;  %2181 = vmatprep.mubr.msk.f32.mxu1 %vm2623_vm0, %v2624_v2  ;;  %vm76_vm2 = vcmask 31744   ;;  %v63_v3 = vld [vmem:[#allocation4] sm:$0xff]  ;;  %v64_v4 = vld [vmem:[#allocation4 + $0x8] sm:$0xff]  ;;  %v69_v8 = vld [vmem:[%s2978_s0 + $0x8] sm:$0xff]  ;;  %s2625_s19 = smov 64   ;;  %vm266_vm3 = vcmask 254976  }
  0x2a   :  { %v62_v5 = vld [vmem:[%s2979_s1] sm:$0xf]  ;;  %v2711_v6 = vpack.c.bf16 %v64_v4, %v63_v3  ;;  %v66_v10 = vld [vmem:[#allocation4 + $0x18] sm:$0xff]  ;;  %vm162_vm4 = vcmask 261120   ;;  %vm376_vm5 = vcmask 257026   ;;  %vm602_vm6 = vcmask 261126  }
  0x2b   :  { %2168 = vmatprep.subr.msk.mxu0 %vm83_vm1, %v62_v5  ;;  %v68_v7 = vld [vmem:[%s2978_s0] sm:$0xff]  ;;  %vm489_vm7 = vcmask 259076   ;;  %s2627_s29 = smov 96   ;;  %vm2016_vm8 = vcmask 7174  }
  0x2c   :  { %v65_v9 = vld [vmem:[#allocation4 + $0x10] sm:$0xff]  ;;  %2169 = vmatpush3.msk.msra.mxu0 %vm83_vm1, %v62_v5  ;;  %2170 = vmatprep.mubr.msk.f32.mxu0 %vm76_vm2, %v68_v7  ;;  %v2024_v12 = vld [vmem:[%s2981_s3] ss:$0 sm:$0xff]  ;;  %s2626_s3 = smov 32  }
  0x2d   :  { %2362 = vmatpush3.bf16.msra.mxu1 %v2711_v6  ;;  %2171 = vmatmul.mubr.msk.f32.vlgmr.msra.gmra.mrb[0].mxu0 %vm76_vm2, %v69_v8  ;;  %v2720_v11 = vpack.c.bf16 %v66_v10, %v65_v9 }
  0x2e   :  { %2363 = vmatprep.subr.bf16.mxu1 %v2622_v1  ;;  %2366 = vmatprep.subr.bf16.mxu0 %v2622_v1 }
  0x2f   :  { %2368 = vmatpush3.bf16.msra.mxu0 %v2711_v6  ;;  %2192 = vmatprep.mubr.msk.f32.mxu0 %vm2623_vm0, %v2624_v2 }
  0x30   :  { %2369 = vmatprep.subr.bf16.mxu0 %v2622_v1 }
  0x31   :  { %2365 = vmatpush3.bf16.msra.mxu1 %v2720_v11 }
  0x32   :  { %2372 = vmatprep.subr.bf16.mxu1 %v2622_v1 }
  0x33   :  { %2371 = vmatpush3.bf16.msra.mxu0 %v2720_v11 }
  0x34   :  { %2182 = vmatmul.mubr.f32.vlgmr.msra.gmra.mrb[0].mxu1 %v2624_v2  ;;  %2378 = vmatprep.subr.bf16.mxu0 %v2622_v1 }
  0x35   :  { %2374 = vmatpush3.bf16.msra.mxu1 %v2711_v6  ;;  %2203 = vmatprep.mubr.msk.f32.mxu1 %vm2623_vm0, %v2624_v2 }
  0x36   :  { %2375 = vmatprep.subr.bf16.mxu1 %v2622_v1 }
  0x39   :  { %2377 = vmatpush3.bf16.msra.mxu1 %v2720_v11 }
  0x3a   :  { %2384 = vmatprep.subr.bf16.mxu1 %v2622_v1 }
 0x100   :  { %v2172_v13 = vpop.f32.mrb[0].mxu0 }
 0x101   :  { %v2742_v14 = vadd.f32 %v2172_v13, %v2024_v12  ;;  %v153_v15 = vpop.f32.mrb[1].mxu0 }
 0x102   :  { %v2744_v16 = vadd.f32 %v2024_v12, %v153_v15 }
 0x107   :  { %v232_v17 = vpop.f32.mrb[0].mxu1 }
 0x108   :  { %v236_v18 = vadd.f32 %v232_v17, %v2744_v16  ;;  %v2183_v19 = vpop.f32.mrb[1].mxu1 }
 0x10a   :  { %v2028_v20 = vmul.f32 -1.442695, %v236_v18 }
 0x10c   :  { %2474 = vpow2.f32 %v2028_v20 }
 0x116   :  { %v2475_v21 = vpop.eup %2474 }
 0x117   :  { %v240_v22 = vadd.f32 1.0, %v2475_v21 }
 0x119   :  { %2476 = vrcp.f32 %v240_v22 }
 0x123   :  { %v2477_v23 = vpop.eup %2476 }
 0x124   :  { %v243_v24 = vmul.f32 2.0, %v2477_v23  ;;  %v245_v28 = vmul.f32 0.0, %v2477_v23 }
 0x126   :  { %v2029_v25 = vadd.f32 -1.0, %v243_v24 }
 0x128   :  { %247 = vrot.lane.b32.xlu0 %v2029_v25, %s2625_s19 }
 0x19a   :  { %v248_v26 = vpop.permute.xlu0 %247 }
 0x19b   :  { %v250_v27 = vmul.f32 %v2477_v23, %v248_v26 }
 0x19d   :  { %252 = vrot.lane.b32.xlu0 %v250_v27, %s2626_s3 }
 0x20f   :  { %v253_v29 = vpop.permute.xlu0 %252 }
 0x210   :  { %v255_v30 = vadd.f32 %v253_v29, %v245_v28 }
 0x212   :  { %2478 = vtanh.f32 %v255_v30  ;;  %v353_v47 = vrot.slane %v255_v30, 6 }
 0x21c   :  { %v2479_v31 = vpop.eup %2478 }
 0x21d   :  { %258 = vrot.lane.b32.xlu1 %v2479_v31, %s2625_s19 }
 0x28f   :  { %v259_v32 = vpop.permute.xlu1 %258 }
 0x290   :  { %v261_v33 = vmul.f32 %v2477_v23, %v259_v32 }
 0x292   :  { %263 = vrot.lane.b32.xlu1 %v261_v33, %s2626_s3 }
 0x304   :  { %v264_v34 = vpop.permute.xlu1 %263 }
 0x305   :  { %267 = vst.msk [vmem:[#allocation2] sm:$0x3] %vm266_vm3, %v264_v34  ;;  %2193 = vmatmul.mubr.msk.f32.vlgmr.msra.gmra.mrb[2].mxu0 %vm162_vm4, %v264_v34 }
 0x306   :  { %2380 = vmatpush3.bf16.msra.mxu0 %v2711_v6  ;;  %2214 = vmatprep.mubr.msk.f32.mxu0 %vm2623_vm0, %v2624_v2 }
 0x307   :  { %2381 = vmatprep.subr.bf16.mxu0 %v2622_v1 }
 0x30a   :  { %2383 = vmatpush3.bf16.msra.mxu0 %v2720_v11 }
 0x30b   :  { %2390 = vmatprep.subr.bf16.mxu0 %v2622_v1 }
 0x3d8   :  { %v336_v35 = vpop.f32.mrb[2].mxu0 }
 0x3d9   :  { %v341_v36 = vrot.slane %v336_v35, 6  ;;  %v2194_v37 = vpop.f32.mrb[3].mxu0 }
 0x3db   :  { %v343_v38 = vadd.f32 %v341_v36, %v2744_v16 }
 0x3dd   :  { %v2031_v39 = vmul.f32 -1.442695, %v343_v38 }
 0x3df   :  { %2480 = vpow2.f32 %v2031_v39 }
 0x3e9   :  { %v2481_v40 = vpop.eup %2480 }
 0x3ea   :  { %v347_v41 = vadd.f32 1.0, %v2481_v40 }
 0x3ec   :  { %2482 = vrcp.f32 %v347_v41 }
 0x3f6   :  { %v2483_v42 = vpop.eup %2482 }
 0x3f7   :  { %v350_v43 = vmul.f32 2.0, %v2483_v42  ;;  %v355_v48 = vmul.f32 %v2483_v42, %v353_v47 }
 0x3f9   :  { %v2032_v44 = vadd.f32 -1.0, %v350_v43 }
 0x3fb   :  { %357 = vrot.lane.b32.xlu0 %v2032_v44, %s2625_s19 }
 0x46d   :  { %v358_v45 = vpop.permute.xlu0 %357 }
 0x46e   :  { %v360_v46 = vmul.f32 %v2483_v42, %v358_v45 }
 0x470   :  { %362 = vrot.lane.b32.xlu1 %v360_v46, %s2626_s3 }
 0x4e2   :  { %v363_v49 = vpop.permute.xlu1 %362 }
 0x4e3   :  { %v365_v50 = vadd.f32 %v363_v49, %v355_v48 }
 0x4e5   :  { %2484 = vtanh.f32 %v365_v50  ;;  %v466_v7 = vrot.slane %v365_v50, 6 }
 0x4ef   :  { %v2485_v51 = vpop.eup %2484 }
 0x4f0   :  { %368 = vrot.lane.b32.xlu0 %v2485_v51, %s2625_s19 }
 0x562   :  { %v369_v52 = vpop.permute.xlu0 %368 }
 0x563   :  { %v2763_v53 = vmul.f32 %v2483_v42, %v369_v52 }
 0x565   :  { %v378_v54 = vrot.slane %v2763_v53, 2 }
 0x567   :  { %379 = vrot.lane.b32.xlu1 %v378_v54, %s2626_s3 }
 0x5d9   :  { %v380_v55 = vpop.permute.xlu1 %379 }
 0x5da   :  { %2204 = vmatmul.mubr.msk.f32.vlgmr.msra.gmra.mrb[2].mxu1 %vm162_vm4, %v380_v55 }
 0x5db   :  { %2386 = vmatpush3.bf16.msra.mxu1 %v2711_v6  ;;  %2225 = vmatprep.mubr.msk.f32.mxu1 %vm2623_vm0, %v2624_v2 }
 0x5dc   :  { %2387 = vmatprep.subr.bf16.mxu1 %v2622_v1 }
 0x5df   :  { %2389 = vmatpush3.bf16.msra.mxu1 %v2720_v11 }
 0x5e0   :  { %2396 = vmatprep.subr.bf16.mxu1 %v2622_v1 }
 0x6ad   :  { %v449_v56 = vpop.f32.mrb[2].mxu1 }
 0x6ae   :  { %v454_v57 = vrot.slane %v449_v56, 4  ;;  %v2205_v58 = vpop.f32.mrb[3].mxu1 }
 0x6b0   :  { %v456_v59 = vadd.f32 %v454_v57, %v2744_v16 }
 0x6b2   :  { %v2034_v60 = vmul.f32 -1.442695, %v456_v59 }
 0x6b4   :  { %2486 = vpow2.f32 %v2034_v60 }
 0x6be   :  { %v2487_v61 = vpop.eup %2486 }
 0x6bf   :  { %v460_v62 = vadd.f32 1.0, %v2487_v61 }
 0x6c1   :  { %2488 = vrcp.f32 %v460_v62 }
 0x6cb   :  { %v2489_v63 = vpop.eup %2488 }
 0x6cc   :  { %v463_v0 = vmul.f32 2.0, %v2489_v63  ;;  %v468_v8 = vmul.f32 %v2489_v63, %v466_v7 }
 0x6ce   :  { %v2035_v3 = vadd.f32 -1.0, %v463_v0 }
 0x6d0   :  { %470 = vrot.lane.b32.xlu0 %v2035_v3, %s2625_s19 }
 0x742   :  { %v471_v4 = vpop.permute.xlu0 %470 }
 0x743   :  { %v473_v5 = vmul.f32 %v2489_v63, %v471_v4 }
 0x745   :  { %475 = vrot.lane.b32.xlu1 %v473_v5, %s2626_s3 }
 0x7b7   :  { %v476_v9 = vpop.permute.xlu1 %475 }
 0x7b8   :  { %v478_v10 = vadd.f32 %v476_v9, %v468_v8 }
 0x7ba   :  { %2490 = vtanh.f32 %v478_v10  ;;  %v579_v31 = vrot.slane %v478_v10, 6 }
 0x7c4   :  { %v2491_v12 = vpop.eup %2490 }
 0x7c5   :  { %481 = vrot.lane.b32.xlu0 %v2491_v12, %s2625_s19 }
 0x837   :  { %v482_v13 = vpop.permute.xlu0 %481 }
 0x838   :  { %v2778_v15 = vmul.f32 %v2489_v63, %v482_v13 }
 0x83a   :  { %v491_v17 = vrot.slane %v2778_v15, 4 }
 0x83c   :  { %492 = vrot.lane.b32.xlu1 %v491_v17, %s2626_s3 }
 0x8ae   :  { %v493_v18 = vpop.permute.xlu1 %492 }
 0x8af   :  { %2215 = vmatmul.mubr.msk.f32.vlgmr.msra.gmra.mrb[4].mxu0 %vm162_vm4, %v493_v18 }
 0x8b0   :  { %2392 = vmatpush3.bf16.msra.mxu0 %v2711_v6  ;;  %2236 = vmatprep.mubr.msk.f32.mxu0 %vm2623_vm0, %v2624_v2 }
 0x8b1   :  { %2393 = vmatprep.subr.bf16.mxu0 %v2622_v1 }
 0x8b4   :  { %2395 = vmatpush3.bf16.msra.mxu0 %v2720_v11 }
 0x8b5   :  { %2402 = vmatprep.subr.bf16.mxu0 %v2622_v1 }
 0x982   :  { %v562_v19 = vpop.f32.mrb[4].mxu0 }
 0x983   :  { %v567_v20 = vrot.slane %v562_v19, 2  ;;  %v2216_v21 = vpop.f32.mrb[5].mxu0 }
 0x985   :  { %v569_v22 = vadd.f32 %v567_v20, %v2744_v16 }
 0x987   :  { %v2037_v23 = vmul.f32 -1.442695, %v569_v22 }
 0x989   :  { %2492 = vpow2.f32 %v2037_v23 }
 0x993   :  { %v2493_v24 = vpop.eup %2492 }
 0x994   :  { %v573_v25 = vadd.f32 1.0, %v2493_v24 }
 0x996   :  { %2494 = vrcp.f32 %v573_v25 }
 0x9a0   :  { %v2495_v26 = vpop.eup %2494 }
 0x9a1   :  { %v576_v27 = vmul.f32 2.0, %v2495_v26  ;;  %v581_v32 = vmul.f32 %v2495_v26, %v579_v31 }
 0x9a3   :  { %v2038_v28 = vadd.f32 -1.0, %v576_v27 }
 0x9a5   :  { %583 = vrot.lane.b32.xlu0 %v2038_v28, %s2625_s19 }
 0xa17   :  { %v584_v29 = vpop.permute.xlu0 %583 }
 0xa18   :  { %v586_v30 = vmul.f32 %v2495_v26, %v584_v29 }
 0xa1a   :  { %588 = vrot.lane.b32.xlu1 %v586_v30, %s2626_s3 }
 0xa8c   :  { %v589_v33 = vpop.permute.xlu1 %588 }
 0xa8d   :  { %v591_v34 = vadd.f32 %v589_v33, %v581_v32 }
 0xa8f   :  { %2496 = vtanh.f32 %v591_v34  ;;  %v689_v50 = vrot.slane %v591_v34, 6 }
 0xa99   :  { %v2497_v16 = vpop.eup %2496 }
 0xa9a   :  { %594 = vrot.lane.b32.xlu0 %v2497_v16, %s2625_s19 }
 0xb0c   :  { %v595_v35 = vpop.permute.xlu0 %594 }
 0xb0d   :  { %v2793_v36 = vmul.f32 %v2495_v26, %v595_v35 }
 0xb0f   :  { %v604_v37 = vrot.slane %v2793_v36, 6 }
 0xb11   :  { %605 = vrot.lane.b32.xlu1 %v604_v37, %s2626_s3 }
 0xb83   :  { %v606_v38 = vpop.permute.xlu1 %605 }
 0xb84   :  { %2226 = vmatmul.mubr.msk.f32.vlgmr.msra.gmra.mrb[4].mxu1 %vm162_vm4, %v606_v38 }
 0xb85   :  { %2398 = vmatpush3.bf16.msra.mxu1 %v2711_v6  ;;  %2247 = vmatprep.mubr.msk.f32.mxu1 %vm2623_vm0, %v2624_v2 }
 0xb86   :  { %2399 = vmatprep.subr.bf16.mxu1 %v2622_v1 }
 0xb89   :  { %2401 = vmatpush3.bf16.msra.mxu1 %v2720_v11 }
 0xc57   :  { %v675_v39 = vpop.f32.mrb[4].mxu1 }
 0xc58   :  { %v679_v40 = vadd.f32 %v675_v39, %v2742_v14  ;;  %v2227_v41 = vpop.f32.mrb[5].mxu1 }
 0xc5a   :  { %v2040_v42 = vmul.f32 -1.442695, %v679_v40 }
 0xc5c   :  { %2498 = vpow2.f32 %v2040_v42 }
 0xc66   :  { %v2499_v43 = vpop.eup %2498 }
 0xc67   :  { %v683_v44 = vadd.f32 1.0, %v2499_v43 }
 0xc69   :  { %2500 = vrcp.f32 %v683_v44 }
 0xc73   :  { %v2501_v45 = vpop.eup %2500 }
 0xc74   :  { %v686_v46 = vmul.f32 2.0, %v2501_v45  ;;  %v691_v51 = vmul.f32 %v2501_v45, %v689_v50 }
 0xc76   :  { %v2041_v47 = vadd.f32 -1.0, %v686_v46 }
 0xc78   :  { %693 = vrot.lane.b32.xlu0 %v2041_v47, %s2625_s19 }
 0xcea   :  { %v694_v48 = vpop.permute.xlu0 %693 }
 0xceb   :  { %v696_v49 = vmul.f32 %v2501_v45, %v694_v48 }
 0xced   :  { %698 = vrot.lane.b32.xlu1 %v696_v49, %s2626_s3 }
 0xd5f   :  { %v699_v52 = vpop.permute.xlu1 %698 }
 0xd60   :  { %v701_v54 = vadd.f32 %v699_v52, %v691_v51 }
 0xd62   :  { %2502 = vtanh.f32 %v701_v54 }
 0xd6c   :  { %v2503_v55 = vpop.eup %2502 }
 0xd6d   :  { %704 = vrot.lane.b32.xlu0 %v2503_v55, %s2625_s19 }
 0xddf   :  { %v705_v56 = vpop.permute.xlu0 %704 }
 0xde0   :  { %v707_v57 = vmul.f32 %v2501_v45, %v705_v56 }
 0xde2   :  { %709 = vrot.lane.b32.xlu1 %v707_v57, %s2626_s3 }
 0xe54   :  { %v710_v58 = vpop.permute.xlu1 %709 }
 0xe55   :  { %712 = vst.msk [vmem:[#allocation2 + $0x8] sm:$0x3] %vm266_vm3, %v710_v58  ;;  %2237 = vmatmul.mubr.msk.f32.vlgmr.msra.gmra.mrb[6].mxu0 %vm162_vm4, %v710_v58 }
 0xe56   :  { %2404 = vmatpush3.bf16.msra.mxu0 %v2711_v6  ;;  %2258 = vmatprep.mubr.msk.f32.mxu0 %vm2623_vm0, %v2624_v2 }
 0xe57   :  { %2405 = vmatprep.subr.bf16.mxu0 %v2622_v1 }
 0xe5a   :  { %2407 = vmatpush3.bf16.msra.mxu0 %v2720_v11  ;;  %v798_v11 = vrot.slane %v701_v54, 6 }
 0xe5b   :  { %2416 = vmatprep.subr.bf16.mxu0 %v2622_v1 }
 0xf28   :  { %v781_v59 = vpop.f32.mrb[6].mxu0 }
 0xf29   :  { %v786_v60 = vrot.slane %v781_v59, 6  ;;  %v2238_v61 = vpop.f32.mrb[7].mxu0 }
 0xf2a   :  { %v1047_v61 = vld [vmem:[%s2982_s4 + $0x8] sm:$0xff] }
 0xf2b   :  { %v788_v62 = vadd.f32 %v786_v60, %v2742_v14 }
 0xf2d   :  { %v2043_v63 = vmul.f32 -1.442695, %v788_v62 }
 0xf2f   :  { %2504 = vpow2.f32 %v2043_v63  ;;  %v1050_v63 = vld [vmem:[#allocation6] sm:$0xff] }
 0xf39   :  { %v2505_v0 = vpop.eup %2504 }
 0xf3a   :  { %v792_v3 = vadd.f32 1.0, %v2505_v0  ;;  %v1051_v0 = vld [vmem:[#allocation6 + $0x8] sm:$0xff] }
 0xf3c   :  { %2506 = vrcp.f32 %v792_v3  ;;  %v1048_v3 = vld [vmem:[%s2982_s4 + $0x10] sm:$0xff] }
 0xf46   :  { %v2507_v6 = vpop.eup %2506 }
 0xf47   :  { %v795_v4 = vmul.f32 2.0, %v2507_v6  ;;  %v800_v9 = vmul.f32 %v2507_v6, %v798_v11 }
 0xf49   :  { %v2044_v5 = vadd.f32 -1.0, %v795_v4  ;;  %v1052_v4 = vld [vmem:[#allocation6 + $0x10] sm:$0xff] }
 0xf4b   :  { %802 = vrot.lane.b32.xlu0 %v2044_v5, %s2625_s19  ;;  %v1053_v5 = vld [vmem:[#allocation6 + $0x18] sm:$0xff] }
 0xfbd   :  { %v803_v7 = vpop.permute.xlu0 %802 }
 0xfbe   :  { %v805_v8 = vmul.f32 %v2507_v6, %v803_v7 }
 0xfc0   :  { %807 = vrot.lane.b32.xlu1 %v805_v8, %s2626_s3  ;;  %v2864_v8 = vpack.c.bf16 %v1053_v5, %v1052_v4 }
0x1032   :  { %v808_v10 = vpop.permute.xlu1 %807 }
0x1033   :  { %v810_v12 = vadd.f32 %v808_v10, %v800_v9 }
0x1035   :  { %2508 = vtanh.f32 %v810_v12  ;;  %v910_v33 = vrot.slane %v810_v12, 6 }
0x103f   :  { %v2509_v13 = vpop.eup %2508 }
0x1040   :  { %813 = vrot.lane.b32.xlu0 %v2509_v13, %s2625_s19 }
0x10b2   :  { %v814_v17 = vpop.permute.xlu0 %813 }
0x10b3   :  { %v2820_v18 = vmul.f32 %v2507_v6, %v814_v17  ;;  %v1049_v6 = vld [vmem:[%s2982_s4 + $0x18] sm:$0xff] }
0x10b4   :  { %v2412_v7 = vpack.c.bf16 %v1049_v6, %v1048_v3 }
0x10b5   :  { %v822_v19 = vrot.slane %v2820_v18, 2 }
0x10b7   :  { %823 = vrot.lane.b32.xlu1 %v822_v19, %s2626_s3 }
0x1129   :  { %v824_v20 = vpop.permute.xlu1 %823 }
0x112a   :  { %2248 = vmatmul.mubr.msk.f32.vlgmr.msra.gmra.mrb[6].mxu1 %vm162_vm4, %v824_v20 }
0x11fd   :  { %v893_v21 = vpop.f32.mrb[6].mxu1 }
0x11fe   :  { %v898_v22 = vrot.slane %v893_v21, 4  ;;  %v2249_v23 = vpop.f32.mrb[7].mxu1  ;;  %v2051_v21 = vld [vmem:[%s2984_s6] ss:$0 sm:$0xff] }
0x1200   :  { %v900_v24 = vadd.f32 %v898_v22, %v2742_v14 }
0x1202   :  { %v2046_v25 = vmul.f32 -1.442695, %v900_v24 }
0x1204   :  { %2510 = vpow2.f32 %v2046_v25 }
0x120e   :  { %v2511_v26 = vpop.eup %2510 }
0x120f   :  { %v904_v27 = vadd.f32 1.0, %v2511_v26 }
0x1211   :  { %2512 = vrcp.f32 %v904_v27 }
0x121b   :  { %v2513_v28 = vpop.eup %2512 }
0x121c   :  { %v907_v29 = vmul.f32 2.0, %v2513_v28  ;;  %v912_v34 = vmul.f32 %v2513_v28, %v910_v33 }
0x121e   :  { %v2047_v30 = vadd.f32 -1.0, %v907_v29 }
0x1220   :  { %914 = vrot.lane.b32.xlu0 %v2047_v30, %s2625_s19 }
0x1292   :  { %v915_v31 = vpop.permute.xlu0 %914 }
0x1293   :  { %v917_v32 = vmul.f32 %v2513_v28, %v915_v31 }
0x1295   :  { %919 = vrot.lane.b32.xlu1 %v917_v32, %s2626_s3 }
0x1307   :  { %v920_v16 = vpop.permute.xlu1 %919 }
0x1308   :  { %v922_v35 = vadd.f32 %v920_v16, %v912_v34 }
0x130a   :  { %2514 = vtanh.f32 %v922_v35 }
0x1314   :  { %v2515_v37 = vpop.eup %2514 }
0x1315   :  { %925 = vrot.lane.b32.xlu0 %v2515_v37, %s2625_s19 }
0x1387   :  { %v926_v38 = vpop.permute.xlu0 %925 }
0x1388   :  { %v928_v39 = vmul.f32 %v2513_v28, %v926_v38 }
0x138a   :  { %v934_v40 = vrot.slane %v928_v39, 4 }
0x138c   :  { %935 = vrot.lane.b32.xlu1 %v934_v40, %s2626_s3 }
0x13fe   :  { %v936_v41 = vpop.permute.xlu1 %935 }
0x13ff   :  { %2259 = vmatmul.mubr.msk.f32.vlgmr.msra.gmra.mrb[8].mxu0 %vm162_vm4, %v936_v41 }
0x1400   :  { %2280 = vmatprep.mubr.msk.f32.mxu0 %vm2623_vm0, %v2624_v2 }
0x14d2   :  { %v1005_v42 = vpop.f32.mrb[8].mxu0 }
0x14d3   :  { %v1010_v43 = vrot.slane %v1005_v42, 2  ;;  %v2260_v44 = vpop.f32.mrb[9].mxu0 }
0x14d5   :  { %v1012_v45 = vadd.f32 %v1010_v43, %v2742_v14  ;;  %v1022_v14 = vrot.slane %v922_v35, 6 }
0x14d7   :  { %v2049_v46 = vmul.f32 -1.442695, %v1012_v45 }
0x14d9   :  { %2516 = vpow2.f32 %v2049_v46 }
0x14e3   :  { %v2517_v47 = vpop.eup %2516 }
0x14e4   :  { %v1016_v48 = vadd.f32 1.0, %v2517_v47 }
0x14e6   :  { %2518 = vrcp.f32 %v1016_v48 }
0x14f0   :  { %v2519_v49 = vpop.eup %2518 }
0x14f1   :  { %v1019_v50 = vmul.f32 2.0, %v2519_v49  ;;  %v1024_v55 = vmul.f32 %v2519_v49, %v1022_v14 }
0x14f3   :  { %v2050_v51 = vadd.f32 -1.0, %v1019_v50 }
0x14f5   :  { %1026 = vrot.lane.b32.xlu0 %v2050_v51, %s2625_s19 }
0x1567   :  { %v1027_v52 = vpop.permute.xlu0 %1026 }
0x1568   :  { %v1029_v54 = vmul.f32 %v2519_v49, %v1027_v52 }
0x156a   :  { %1031 = vrot.lane.b32.xlu1 %v1029_v54, %s2626_s3 }
0x156e   :  { %373 = vrot.lane.b32.xlu1 %v2763_v53, %s2626_s3 }
0x1572   :  { %599 = vrot.lane.b32.xlu1 %v2793_v36, %s2626_s3  ;;  %v1046_v36 = vld [vmem:[%s2982_s4] sm:$0xff] }
0x1573   :  { %v2408_v62 = vpack.c.bf16 %v1047_v61, %v1046_v36 }
0x1575   :  { %2409 = vmatprep.subr.bf16.mxu1 %v2408_v62 }
0x1576   :  { %930 = vrot.lane.b32.xlu1 %v928_v39, %s2626_s3  ;;  %2411 = vmatpush3.bf16.msra.mxu1 %v2408_v62 }
0x1577   :  { %2413 = vmatprep.subr.bf16.mxu1 %v2412_v7 }
0x157a   :  { %2415 = vmatpush3.bf16.msra.mxu1 %v2412_v7 }
0x157b   :  { %2422 = vmatprep.subr.bf16.mxu1 %v2622_v1 }
0x15dc   :  { %v1032_v56 = vpop.permute.xlu1 %1031 }
0x15dd   :  { %v1034_v57 = vadd.f32 %v1032_v56, %v1024_v55 }
0x15df   :  { %2520 = vtanh.f32 %v1034_v57 }
0x15e0   :  { %v374_v58 = vpop.permute.xlu1 %373 }
0x15e1   :  { %377 = vst.msk [vmem:[#allocation2] sm:$0xc] %vm376_vm5, %v374_v58 }
0x15e4   :  { %v600_v59 = vpop.permute.xlu1 %599 }
0x15e5   :  { %603 = vst.msk [vmem:[#allocation2] sm:$0xc0] %vm602_vm6, %v600_v59 }
0x15e8   :  { %v931_v53 = vpop.permute.xlu1 %930 }
0x15e9   :  { %v2521_v60 = vpop.eup %2520  ;;  %933 = vst.msk [vmem:[#allocation2 + $0x8] sm:$0x30] %vm489_vm7, %v931_v53 }
0x15ea   :  { %1037 = vrot.lane.b32.xlu0 %v2521_v60, %s2625_s19 }
0x15ee   :  { %486 = vrot.lane.b32.xlu0 %v2778_v15, %s2626_s3  ;;  %v2858_v15 = vpack.c.bf16 %v1051_v0, %v1050_v63 }
0x15f0   :  { %2418 = vmatpush3.bf16.msra.mxu0 %v2858_v15 }
0x15f1   :  { %2419 = vmatprep.subr.bf16.mxu0 %v2622_v1 }
0x15f2   :  { %818 = vrot.lane.b32.xlu0 %v2820_v18, %s2626_s3 }
0x15f4   :  { %2421 = vmatpush3.bf16.msra.mxu0 %v2864_v8 }
0x15f5   :  { %2428 = vmatprep.subr.bf16.mxu0 %v2622_v1 }
0x15f7   :  { %2281 = vmatmul.mubr.f32.vlgmr.msra.gmra.mrb[10].mxu0 %v2624_v2 }
0x15f8   :  { %2430 = vmatpush3.bf16.msra.mxu0 %v2858_v15  ;;  %2302 = vmatprep.mubr.msk.f32.mxu0 %vm2623_vm0, %v2624_v2 }
0x15f9   :  { %2431 = vmatprep.subr.bf16.mxu0 %v2622_v1 }
0x15fc   :  { %2433 = vmatpush3.bf16.msra.mxu0 %v2864_v8 }
0x15fd   :  { %2440 = vmatprep.subr.bf16.mxu0 %v2622_v1 }
0x165c   :  { %v1038_v11 = vpop.permute.xlu0 %1037 }
0x165d   :  { %v1040_v9 = vmul.f32 %v2519_v49, %v1038_v11 }
0x165f   :  { %1042 = vrot.lane.b32.xlu0 %v1040_v9, %s2626_s3 }
0x1660   :  { %v487_v10 = vpop.permute.xlu0 %486 }
0x1661   :  { %490 = vst.msk [vmem:[#allocation2] sm:$0x30] %vm489_vm7, %v487_v10 }
0x1664   :  { %v819_v12 = vpop.permute.xlu0 %818 }
0x1665   :  { %821 = vst.msk [vmem:[#allocation2 + $0x8] sm:$0xc] %vm376_vm5, %v819_v12 }
0x1668   :  { %v1055_v13 = vld [vmem:[#allocation2] sm:$0xff] }
0x1669   :  { %2269 = vmatprep.mubr.msk.f32.mxu1 %vm162_vm4, %v1055_v13 }
0x16ca   :  { %v1210_v19 = vpop.f32.mrb[10].mxu0 }
0x16cb   :  { %v2282_v20 = vpop.f32.mrb[11].mxu0 }
0x16d1   :  { %v1043_v17 = vpop.permute.xlu0 %1042 }
0x16d2   :  { %1045 = vst.msk [vmem:[#allocation2 + $0x8] sm:$0xc0] %vm602_vm6, %v1043_v17 }
0x16d9   :  { %v1056_v18 = vld [vmem:[#allocation2 + $0x8] sm:$0xff] }
0x16da   :  { %2270 = vmatmul.mubr.msk.f32.vlgmr.msra.gmra.mrb[8].mxu1 %vm162_vm4, %v1056_v18 }
0x16db   :  { %2424 = vmatpush3.bf16.msra.mxu1 %v2858_v15  ;;  %2291 = vmatprep.mubr.msk.f32.mxu1 %vm2623_vm0, %v2624_v2 }
0x16dc   :  { %2425 = vmatprep.subr.bf16.mxu1 %v2622_v1 }
0x16df   :  { %2427 = vmatpush3.bf16.msra.mxu1 %v2864_v8 }
0x16e0   :  { %2434 = vmatprep.subr.bf16.mxu1 %v2622_v1 }
0x17ad   :  { %v2271_v22 = vpop.f32.mrb[8].mxu1 }
0x17ae   :  { %v2892_v23 = vadd.f32 %v2271_v22, %v2051_v21  ;;  %v1135_v24 = vpop.f32.mrb[9].mxu1 }
0x17af   :  { %v2894_v25 = vadd.f32 %v2051_v21, %v1135_v24 }
0x17b1   :  { %v1214_v26 = vadd.f32 %v1210_v19, %v2894_v25 }
0x17b3   :  { %v2054_v27 = vmul.f32 -1.442695, %v1214_v26 }
0x17b5   :  { %2522 = vpow2.f32 %v2054_v27 }
0x17bf   :  { %v2523_v28 = vpop.eup %2522 }
0x17c0   :  { %v1218_v29 = vadd.f32 1.0, %v2523_v28 }
0x17c2   :  { %2524 = vrcp.f32 %v1218_v29 }
0x17cc   :  { %v2525_v30 = vpop.eup %2524 }
0x17cd   :  { %v1221_v31 = vmul.f32 2.0, %v2525_v30  ;;  %v1223_v16 = vmul.f32 0.0, %v2525_v30 }
0x17cf   :  { %v2055_v32 = vadd.f32 -1.0, %v1221_v31 }
0x17d1   :  { %1225 = vrot.lane.b32.xlu1 %v2055_v32, %s2625_s19 }
0x1843   :  { %v1226_v33 = vpop.permute.xlu1 %1225 }
0x1844   :  { %v1228_v34 = vmul.f32 %v2525_v30, %v1226_v33 }
0x1846   :  { %1230 = vrot.lane.b32.xlu0 %v1228_v34, %s2626_s3 }
0x18b8   :  { %v1231_v35 = vpop.permute.xlu0 %1230 }
0x18b9   :  { %v1233_v37 = vadd.f32 %v1231_v35, %v1223_v16 }
0x18bb   :  { %2526 = vtanh.f32 %v1233_v37  ;;  %v1328_v14 = vrot.slane %v1233_v37, 6 }
0x18c5   :  { %v2527_v38 = vpop.eup %2526 }
0x18c6   :  { %1236 = vrot.lane.b32.xlu1 %v2527_v38, %s2625_s19 }
0x1938   :  { %v1237_v39 = vpop.permute.xlu1 %1236 }
0x1939   :  { %v1239_v40 = vmul.f32 %v2525_v30, %v1237_v39 }
0x193b   :  { %1241 = vrot.lane.b32.xlu0 %v1239_v40, %s2626_s3 }
0x19ad   :  { %v1242_v41 = vpop.permute.xlu0 %1241 }
0x19ae   :  { %2292 = vmatmul.mubr.msk.f32.vlgmr.msra.gmra.mrb[10].mxu1 %vm162_vm4, %v1242_v41 }
0x19af   :  { %2436 = vmatpush3.bf16.msra.mxu1 %v2858_v15  ;;  %2313 = vmatprep.mubr.msk.f32.mxu1 %vm2623_vm0, %v2624_v2 }
0x19b0   :  { %2437 = vmatprep.subr.bf16.mxu1 %v2622_v1 }
0x19b3   :  { %2439 = vmatpush3.bf16.msra.mxu1 %v2864_v8 }
0x19b4   :  { %2446 = vmatprep.subr.bf16.mxu1 %v2622_v1 }
0x1a81   :  { %v1311_v42 = vpop.f32.mrb[10].mxu1 }
0x1a82   :  { %v1316_v43 = vrot.slane %v1311_v42, 6  ;;  %v2293_v44 = vpop.f32.mrb[11].mxu1 }
0x1a84   :  { %v1318_v45 = vadd.f32 %v1316_v43, %v2894_v25 }
0x1a86   :  { %v2057_v46 = vmul.f32 -1.442695, %v1318_v45 }
0x1a88   :  { %2528 = vpow2.f32 %v2057_v46 }
0x1a92   :  { %v2529_v47 = vpop.eup %2528 }
0x1a93   :  { %v1322_v48 = vadd.f32 1.0, %v2529_v47 }
0x1a95   :  { %2530 = vrcp.f32 %v1322_v48 }
0x1a9f   :  { %v2531_v49 = vpop.eup %2530 }
0x1aa0   :  { %v1325_v50 = vmul.f32 2.0, %v2531_v49  ;;  %v1330_v55 = vmul.f32 %v2531_v49, %v1328_v14 }
0x1aa2   :  { %v2058_v51 = vadd.f32 -1.0, %v1325_v50 }
0x1aa4   :  { %1332 = vrot.lane.b32.xlu1 %v2058_v51, %s2625_s19 }
0x1b16   :  { %v1333_v52 = vpop.permute.xlu1 %1332 }
0x1b17   :  { %v1335_v54 = vmul.f32 %v2531_v49, %v1333_v52 }
0x1b19   :  { %1337 = vrot.lane.b32.xlu0 %v1335_v54, %s2626_s3 }
0x1b8b   :  { %v1338_v56 = vpop.permute.xlu0 %1337 }
0x1b8c   :  { %v1340_v57 = vadd.f32 %v1338_v56, %v1330_v55 }
0x1b8e   :  { %2532 = vtanh.f32 %v1340_v57  ;;  %v1436_v12 = vrot.slane %v1340_v57, 6 }
0x1b98   :  { %v2533_v58 = vpop.eup %2532 }
0x1b99   :  { %1343 = vrot.lane.b32.xlu1 %v2533_v58, %s2625_s19 }
0x1c0b   :  { %v1344_v59 = vpop.permute.xlu1 %1343 }
0x1c0c   :  { %v1346_v53 = vmul.f32 %v2531_v49, %v1344_v59 }
0x1c0e   :  { %v1348_v60 = vrot.slane %v1346_v53, 2 }
0x1c10   :  { %1349 = vrot.lane.b32.xlu0 %v1348_v60, %s2626_s3 }
0x1c82   :  { %v1350_v36 = vpop.permute.xlu0 %1349 }
0x1c83   :  { %2303 = vmatmul.mubr.msk.f32.vlgmr.msra.gmra.mrb[12].mxu0 %vm162_vm4, %v1350_v36 }
0x1c84   :  { %2442 = vmatpush3.bf16.msra.mxu0 %v2858_v15  ;;  %2324 = vmatprep.mubr.msk.f32.mxu0 %vm2623_vm0, %v2624_v2 }
0x1c85   :  { %2443 = vmatprep.subr.bf16.mxu0 %v2622_v1 }
0x1c88   :  { %2445 = vmatpush3.bf16.msra.mxu0 %v2864_v8 }
0x1c89   :  { %2452 = vmatprep.subr.bf16.mxu0 %v2622_v1 }
0x1d56   :  { %v1419_v61 = vpop.f32.mrb[12].mxu0 }
0x1d57   :  { %v1424_v62 = vrot.slane %v1419_v61, 4  ;;  %v2304_v63 = vpop.f32.mrb[13].mxu0 }
0x1d59   :  { %v1426_v0 = vadd.f32 %v1424_v62, %v2894_v25 }
0x1d5b   :  { %v2060_v3 = vmul.f32 -1.442695, %v1426_v0 }
0x1d5d   :  { %2534 = vpow2.f32 %v2060_v3 }
0x1d67   :  { %v2535_v6 = vpop.eup %2534 }
0x1d68   :  { %v1430_v4 = vadd.f32 1.0, %v2535_v6 }
0x1d6a   :  { %2536 = vrcp.f32 %v1430_v4 }
0x1d74   :  { %v2537_v5 = vpop.eup %2536 }
0x1d75   :  { %v1433_v7 = vmul.f32 2.0, %v2537_v5  ;;  %v1438_v13 = vmul.f32 %v2537_v5, %v1436_v12 }
0x1d77   :  { %v2061_v11 = vadd.f32 -1.0, %v1433_v7 }
0x1d79   :  { %1440 = vrot.lane.b32.xlu1 %v2061_v11, %s2625_s19 }
0x1deb   :  { %v1441_v9 = vpop.permute.xlu1 %1440 }
0x1dec   :  { %v1443_v10 = vmul.f32 %v2537_v5, %v1441_v9 }
0x1dee   :  { %1445 = vrot.lane.b32.xlu0 %v1443_v10, %s2626_s3 }
0x1e60   :  { %v1446_v17 = vpop.permute.xlu0 %1445 }
0x1e61   :  { %v1448_v18 = vadd.f32 %v1446_v17, %v1438_v13 }
0x1e63   :  { %2538 = vtanh.f32 %v1448_v18  ;;  %v1544_v38 = vrot.slane %v1448_v18, 6 }
0x1e6d   :  { %v2539_v19 = vpop.eup %2538 }
0x1e6e   :  { %1451 = vrot.lane.b32.xlu1 %v2539_v19, %s2625_s19 }
0x1ee0   :  { %v1452_v20 = vpop.permute.xlu1 %1451 }
0x1ee1   :  { %v1454_v21 = vmul.f32 %v2537_v5, %v1452_v20 }
0x1ee3   :  { %v1456_v22 = vrot.slane %v1454_v21, 4 }
0x1ee5   :  { %1457 = vrot.lane.b32.xlu0 %v1456_v22, %s2626_s3 }
0x1f57   :  { %v1458_v24 = vpop.permute.xlu0 %1457 }
0x1f58   :  { %2314 = vmatmul.mubr.msk.f32.vlgmr.msra.gmra.mrb[12].mxu1 %vm162_vm4, %v1458_v24 }
0x1f59   :  { %2448 = vmatpush3.bf16.msra.mxu1 %v2858_v15  ;;  %2335 = vmatprep.mubr.msk.f32.mxu1 %vm2623_vm0, %v2624_v2 }
0x1f5a   :  { %2449 = vmatprep.subr.bf16.mxu1 %v2622_v1 }
0x1f5d   :  { %2451 = vmatpush3.bf16.msra.mxu1 %v2864_v8 }
0x1f5e   :  { %2458 = vmatprep.subr.bf16.mxu1 %v2622_v1 }
0x202b   :  { %v1527_v26 = vpop.f32.mrb[12].mxu1 }
0x202c   :  { %v1532_v27 = vrot.slane %v1527_v26, 2  ;;  %v2315_v28 = vpop.f32.mrb[13].mxu1 }
0x202e   :  { %v1534_v29 = vadd.f32 %v1532_v27, %v2894_v25 }
0x2030   :  { %v2063_v30 = vmul.f32 -1.442695, %v1534_v29 }
0x2032   :  { %2540 = vpow2.f32 %v2063_v30 }
0x203c   :  { %v2541_v31 = vpop.eup %2540 }
0x203d   :  { %v1538_v32 = vadd.f32 1.0, %v2541_v31 }
0x203f   :  { %2542 = vrcp.f32 %v1538_v32 }
0x2049   :  { %v2543_v33 = vpop.eup %2542 }
0x204a   :  { %v1541_v34 = vmul.f32 2.0, %v2543_v33  ;;  %v1546_v39 = vmul.f32 %v2543_v33, %v1544_v38 }
0x204c   :  { %v2064_v16 = vadd.f32 -1.0, %v1541_v34 }
0x204e   :  { %1548 = vrot.lane.b32.xlu1 %v2064_v16, %s2625_s19 }
0x20c0   :  { %v1549_v35 = vpop.permute.xlu1 %1548 }
0x20c1   :  { %v1551_v37 = vmul.f32 %v2543_v33, %v1549_v35 }
0x20c3   :  { %1553 = vrot.lane.b32.xlu0 %v1551_v37, %s2626_s3 }
0x2135   :  { %v1554_v40 = vpop.permute.xlu0 %1553 }
0x2136   :  { %v1556_v41 = vadd.f32 %v1554_v40, %v1546_v39 }
0x2138   :  { %2544 = vtanh.f32 %v1556_v41  ;;  %v1649_v57 = vrot.slane %v1556_v41, 6 }
0x2142   :  { %v2545_v25 = vpop.eup %2544 }
0x2143   :  { %1559 = vrot.lane.b32.xlu1 %v2545_v25, %s2625_s19 }
0x21b5   :  { %v1560_v42 = vpop.permute.xlu1 %1559 }
0x21b6   :  { %v1562_v43 = vmul.f32 %v2543_v33, %v1560_v42 }
0x21b8   :  { %v1564_v44 = vrot.slane %v1562_v43, 6 }
0x21ba   :  { %1565 = vrot.lane.b32.xlu0 %v1564_v44, %s2626_s3 }
0x222c   :  { %v1566_v45 = vpop.permute.xlu0 %1565 }
0x222d   :  { %2325 = vmatmul.mubr.msk.f32.vlgmr.msra.gmra.mrb[14].mxu0 %vm162_vm4, %v1566_v45 }
0x222e   :  { %2454 = vmatpush3.bf16.msra.mxu0 %v2858_v15  ;;  %2346 = vmatprep.mubr.msk.f32.mxu0 %vm2623_vm0, %v2624_v2 }
0x222f   :  { %2455 = vmatprep.subr.bf16.mxu0 %v2622_v1 }
0x2232   :  { %2457 = vmatpush3.bf16.msra.mxu0 %v2864_v8 }
0x2300   :  { %v1635_v46 = vpop.f32.mrb[14].mxu0 }
0x2301   :  { %v1639_v47 = vadd.f32 %v1635_v46, %v2892_v23  ;;  %v2326_v48 = vpop.f32.mrb[15].mxu0 }
0x2303   :  { %v2066_v49 = vmul.f32 -1.442695, %v1639_v47 }
0x2305   :  { %2546 = vpow2.f32 %v2066_v49 }
0x230f   :  { %v2547_v50 = vpop.eup %2546 }
0x2310   :  { %v1643_v51 = vadd.f32 1.0, %v2547_v50 }
0x2312   :  { %2548 = vrcp.f32 %v1643_v51 }
0x231c   :  { %v2549_v52 = vpop.eup %2548 }
0x231d   :  { %v1646_v54 = vmul.f32 2.0, %v2549_v52  ;;  %v1651_v58 = vmul.f32 %v2549_v52, %v1649_v57 }
0x231f   :  { %v2067_v14 = vadd.f32 -1.0, %v1646_v54 }
0x2321   :  { %1653 = vrot.lane.b32.xlu1 %v2067_v14, %s2625_s19 }
0x2393   :  { %v1654_v55 = vpop.permute.xlu1 %1653 }
0x2394   :  { %v1656_v56 = vmul.f32 %v2549_v52, %v1654_v55 }
0x2396   :  { %1658 = vrot.lane.b32.xlu0 %v1656_v56, %s2626_s3  ;;  %v2077_v56 = vld [vmem:[%s2985_s7] ss:$0 sm:$0xff] }
0x2408   :  { %v1659_v59 = vpop.permute.xlu0 %1658 }
0x2409   :  { %v1661_v53 = vadd.f32 %v1659_v59, %v1651_v58 }
0x240b   :  { %2550 = vtanh.f32 %v1661_v53 }
0x2415   :  { %v2551_v60 = vpop.eup %2550 }
0x2416   :  { %1664 = vrot.lane.b32.xlu1 %v2551_v60, %s2625_s19 }
0x2488   :  { %v1665_v36 = vpop.permute.xlu1 %1664 }
0x2489   :  { %v1667_v61 = vmul.f32 %v2549_v52, %v1665_v36 }
0x248b   :  { %1669 = vrot.lane.b32.xlu0 %v1667_v61, %s2626_s3 }
0x24fd   :  { %v1670_v62 = vpop.permute.xlu0 %1669 }
0x24fe   :  { %2336 = vmatmul.mubr.msk.f32.vlgmr.msra.gmra.mrb[14].mxu1 %vm162_vm4, %v1670_v62 }
0x24ff   :  { %2460 = vmatpush3.bf16.msra.mxu1 %v2858_v15  ;;  %2357 = vmatprep.mubr.msk.f32.mxu1 %vm2623_vm0, %v2624_v2 }
0x2500   :  { %2461 = vmatprep.subr.bf16.mxu1 %v2622_v1  ;;  %v1756_v1 = vrot.slane %v1661_v53, 6 }
0x2503   :  { %2463 = vmatpush3.bf16.msra.mxu1 %v2864_v8 }
0x25d1   :  { %v1739_v63 = vpop.f32.mrb[14].mxu1 }
0x25d2   :  { %v1744_v0 = vrot.slane %v1739_v63, 6  ;;  %v2337_v3 = vpop.f32.mrb[15].mxu1 }
0x25d3   :  { %v2078_v3 = vld [vmem:[#allocation3] ss:$0 sm:$0xff] }
0x25d4   :  { %v1746_v6 = vadd.f32 %v1744_v0, %v2892_v23 }
0x25d6   :  { %v2069_v4 = vmul.f32 -1.442695, %v1746_v6 }
0x25d8   :  { %2552 = vpow2.f32 %v2069_v4 }
0x25e2   :  { %v2553_v5 = vpop.eup %2552 }
0x25e3   :  { %v1750_v7 = vadd.f32 1.0, %v2553_v5 }
0x25e5   :  { %2554 = vrcp.f32 %v1750_v7 }
0x25ef   :  { %v2555_v11 = vpop.eup %2554 }
0x25f0   :  { %v1753_v9 = vmul.f32 2.0, %v2555_v11  ;;  %v1758_v8 = vmul.f32 %v2555_v11, %v1756_v1 }
0x25f2   :  { %v2070_v15 = vadd.f32 -1.0, %v1753_v9 }
0x25f4   :  { %1760 = vrot.lane.b32.xlu1 %v2070_v15, %s2625_s19 }
0x2666   :  { %v1761_v2 = vpop.permute.xlu1 %1760 }
0x2667   :  { %v1763_v10 = vmul.f32 %v2555_v11, %v1761_v2 }
0x2669   :  { %1765 = vrot.lane.b32.xlu0 %v1763_v10, %s2626_s3 }
0x26db   :  { %v1766_v12 = vpop.permute.xlu0 %1765 }
0x26dc   :  { %v1768_v13 = vadd.f32 %v1766_v12, %v1758_v8 }
0x26de   :  { %2556 = vtanh.f32 %v1768_v13  ;;  %v1864_v35 = vrot.slane %v1768_v13, 6 }
0x26e8   :  { %v2557_v17 = vpop.eup %2556 }
0x26e9   :  { %1771 = vrot.lane.b32.xlu1 %v2557_v17, %s2625_s19 }
0x275b   :  { %v1772_v18 = vpop.permute.xlu1 %1771 }
0x275c   :  { %v1774_v19 = vmul.f32 %v2555_v11, %v1772_v18 }
0x275e   :  { %v1776_v20 = vrot.slane %v1774_v19, 2 }
0x2760   :  { %1777 = vrot.lane.b32.xlu0 %v1776_v20, %s2626_s3 }
0x27d2   :  { %v1778_v21 = vpop.permute.xlu0 %1777 }
0x27d3   :  { %2347 = vmatmul.mubr.msk.f32.vlgmr.msra.gmra.mrb[16].mxu0 %vm162_vm4, %v1778_v21 }
0x28a6   :  { %v1847_v22 = vpop.f32.mrb[16].mxu0 }
0x28a7   :  { %v1852_v24 = vrot.slane %v1847_v22, 4  ;;  %v2348_v26 = vpop.f32.mrb[17].mxu0 }
0x28a9   :  { %v1854_v27 = vadd.f32 %v1852_v24, %v2892_v23 }
0x28ab   :  { %v2072_v28 = vmul.f32 -1.442695, %v1854_v27 }
0x28ad   :  { %2558 = vpow2.f32 %v2072_v28 }
0x28b7   :  { %v2559_v29 = vpop.eup %2558 }
0x28b8   :  { %v1858_v30 = vadd.f32 1.0, %v2559_v29 }
0x28ba   :  { %2560 = vrcp.f32 %v1858_v30 }
0x28c4   :  { %v2561_v31 = vpop.eup %2560 }
0x28c5   :  { %v1861_v32 = vmul.f32 2.0, %v2561_v31  ;;  %v1866_v37 = vmul.f32 %v2561_v31, %v1864_v35 }
0x28c7   :  { %v2073_v33 = vadd.f32 -1.0, %v1861_v32 }
0x28c9   :  { %1868 = vrot.lane.b32.xlu1 %v2073_v33, %s2625_s19 }
0x293b   :  { %v1869_v34 = vpop.permute.xlu1 %1868 }
0x293c   :  { %v1871_v16 = vmul.f32 %v2561_v31, %v1869_v34 }
0x293e   :  { %1873 = vrot.lane.b32.xlu0 %v1871_v16, %s2626_s3 }
0x29b0   :  { %v1874_v38 = vpop.permute.xlu0 %1873 }
0x29b1   :  { %v1876_v39 = vadd.f32 %v1874_v38, %v1866_v37 }
0x29b3   :  { %2562 = vtanh.f32 %v1876_v39 }
0x29bd   :  { %v2563_v40 = vpop.eup %2562 }
0x29be   :  { %1879 = vrot.lane.b32.xlu1 %v2563_v40, %s2625_s19 }
0x2a30   :  { %v1880_v41 = vpop.permute.xlu1 %1879 }
0x2a31   :  { %v1882_v25 = vmul.f32 %v2561_v31, %v1880_v41 }
0x2a33   :  { %v1884_v42 = vrot.slane %v1882_v25, 4 }
0x2a35   :  { %1885 = vrot.lane.b32.xlu0 %v1884_v42, %s2626_s3 }
0x2aa7   :  { %v1886_v43 = vpop.permute.xlu0 %1885 }
0x2aa8   :  { %2358 = vmatmul.mubr.msk.f32.vlgmr.msra.gmra.mrb[16].mxu1 %vm162_vm4, %v1886_v43 }
0x2b7b   :  { %v1955_v44 = vpop.f32.mrb[16].mxu1 }
0x2b7c   :  { %v1960_v45 = vrot.slane %v1955_v44, 2  ;;  %v2359_v46 = vpop.f32.mrb[17].mxu1 }
0x2b7e   :  { %v1962_v47 = vadd.f32 %v1960_v45, %v2892_v23  ;;  %v1972_v23 = vrot.slane %v1876_v39, 6 }
0x2b80   :  { %v2075_v48 = vmul.f32 -1.442695, %v1962_v47 }
0x2b82   :  { %2564 = vpow2.f32 %v2075_v48 }
0x2b8c   :  { %v2565_v49 = vpop.eup %2564 }
0x2b8d   :  { %v1966_v50 = vadd.f32 1.0, %v2565_v49 }
0x2b8f   :  { %2566 = vrcp.f32 %v1966_v50 }
0x2b99   :  { %v2567_v51 = vpop.eup %2566 }
0x2b9a   :  { %v1969_v52 = vmul.f32 2.0, %v2567_v51  ;;  %v1974_v57 = vmul.f32 %v2567_v51, %v1972_v23 }
0x2b9c   :  { %v2076_v54 = vadd.f32 -1.0, %v1969_v52 }
0x2b9e   :  { %1976 = vrot.lane.b32.xlu1 %v2076_v54, %s2625_s19 }
0x2c10   :  { %v1977_v14 = vpop.permute.xlu1 %1976 }
0x2c11   :  { %v1979_v55 = vmul.f32 %v2567_v51, %v1977_v14 }
0x2c13   :  { %1981 = vrot.lane.b32.xlu0 %v1979_v55, %s2626_s3 }
0x2c17   :  { %1998 = vrot.lane.b32.xlu0 %v2077_v56, %s2627_s29 }
0x2c85   :  { %v1982_v58 = vpop.permute.xlu0 %1981 }
0x2c86   :  { %v1984_v59 = vadd.f32 %v1982_v58, %v1974_v57 }
0x2c88   :  { %2568 = vtanh.f32 %v1984_v59 }
0x2c89   :  { %v1999_v36 = vpop.permute.xlu0 %1998 }
0x2c92   :  { %v2569_v53 = vpop.eup %2568 }
0x2c93   :  { %1987 = vrot.lane.b32.xlu1 %v2569_v53, %s2625_s19 }
0x2d05   :  { %v1988_v60 = vpop.permute.xlu1 %1987 }
0x2d06   :  { %v1990_v61 = vmul.f32 %v2567_v51, %v1988_v60 }
0x2d08   :  { %v2001_v62 = vmul.f32 %v1999_v36, %v1990_v61 }
0x2d0a   :  { %2003 = vrot.lane.b32.xlu1 %v2001_v62, %s2626_s3 }
0x2d7c   :  { %v2004_v63 = vpop.permute.xlu1 %2003 }
0x2d7d   :  { %v2006_v0 = vsel %vm602_vm6, %v2004_v63, 0.0 }
0x2d7e   :  { %2007 = vadd.xlane.f32.xlu0 %v2006_v0 }
0x2e0b   :  { %v2008_v6 = vpop.xlane.xlu0 %2007 }
0x2e0c   :  { %v2015_v4 = vadd.f32 %v2078_v3, %v2008_v6 }
0x2e0e   :  { %2017 = vst.msk [vmem:[%s2987_s9 - $0x6] sm:$0xc0] %vm2016_vm8, %v2015_v4 }
0x2e0f   :  { %2022 = vsyncpa [#allocation5], 1 }
0x2e10   :  { %2023 = vsyncpa [#allocation7], 1 }

</bundles_post_ra>
